<compile_context>
chip_gen: v7x
topology: tpu7x:2x2x1
jax: 0.10.0
libtpu: 0.0.40
codegen_flags: <defaults>
</compile_context>

<pallas_src>
import math
import functools

import jax
import jax.numpy as jnp
from jax import lax
from jax.experimental import pallas as pl
from jax.experimental.pallas import tpu as pltpu


def _build_fixed_table(c_in, d_model):
    """Exact JAX replica of the PyTorch FixedEmbedding weight construction."""
    assert d_model % 2 == 0, "FixedEmbedding requires an even d_model"
    position = jnp.arange(c_in, dtype=jnp.float32)[:, None]                 # (c_in, 1)
    div_term = jnp.exp(
        jnp.arange(0, d_model, 2, dtype=jnp.float32)
        * (-(math.log(10000.0) / d_model))
    )                                                                       # (d_model//2,)
    w = jnp.zeros((c_in, d_model), dtype=jnp.float32)
    w = w.at[:, 0::2].set(jnp.sin(position * div_term))
    w = w.at[:, 1::2].set(jnp.cos(position * div_term))
    return w


def _fixed_embedding_kernel(idx_ref, w_ref, o_ref, *, k, c_in):
    # idx_ref: (block_rows, k) int32   -- k packed token indices per output row
    # w_ref:   (k*c_in, k*d_model) f32 -- block-diagonal frozen table (VMEM resident
    #                                     via constant index_map; verify residency
    #                                     with pl.lower_as_mlir if paranoid)
    # o_ref:   (block_rows, k*d_model) -- k packed embeddings per row (lane-dense)
    block_rows = idx_ref.shape[0]
    kc = w_ref.shape[0]                                           # k * c_in

    idx = idx_ref[...]                                            # (block_rows, k)
    col = lax.broadcasted_iota(jnp.int32, (block_rows, kc), 1)    # (block_rows, k*c_in)

    # Packed one-hot: slot s of row p activates column s*c_in + idx[p, s].
    # Slots map to disjoint column ranges, so a plain sum builds the 0/1 mask.
    one_hot = jnp.zeros((block_rows, kc), dtype=w_ref.dtype)
    for s in range(k):                                            # k <= 16, unrolled
        one_hot = one_hot + (col == (idx[:, s:s + 1] + s * c_in)).astype(w_ref.dtype)

    # Gather as a one-hot matmul on the MXU.  HIGHEST precision guarantees the
    # f32 multi-pass lowering reproduces table rows exactly (0/1 weights).
    out = jnp.dot(one_hot, w_ref[...],
                  preferred_element_type=jnp.float32,
                  precision=lax.Precision.HIGHEST)
    o_ref[...] = out.astype(o_ref.dtype)
    # NOTE: out-of-range / negative indices yield all-zero rows (one-hot matches
    # nothing) instead of raising like nn.Embedding would.


def fixed_embedding(x, c_in, d_model, *, block_tokens=1024, out_dtype=jnp.float32):
    """Pallas equivalent of FixedEmbedding.forward.

    x: integer index array of any shape (e.g. (B, S)), values in [0, c_in).
    returns: `out_dtype` array of shape x.shape + (d_model,) == table[x]
    block_tokens: tokens per grid step (sweep 512-2048; mem-bound writeback).
    """
    w = _build_fixed_table(c_in, d_model)

    orig_shape = x.shape
    flat = jnp.reshape(x, (-1,)).astype(jnp.int32)               # metadata-only flatten
    n = flat.shape[0]

    # Lane-packing factor: pack k tokens per output row when d_model < 128 so
    # the output tile's last dim is exactly 128 lanes.
    if d_model < 128 and 128 % d_model == 0:
        k = 128 // d_model
    else:
        k = 1

    # Effective tile: block_rows packed rows, multiple of 8 sublanes.
    block_rows = max(8, ((max(block_tokens, k) // k + 7) // 8) * 8)
    block_tokens_eff = block_rows * k

    # Small-n fast path: a single (partial) tile isn't worth a kernel launch;
    # XLA's gather hits the same HBM roofline and fuses with neighbours.
    if n < block_tokens_eff:
        return jnp.take(w, flat, axis=0).astype(out_dtype).reshape(*orig_shape, d_model)

    n_pad = ((n + block_tokens_eff - 1) // block_tokens_eff) * block_tokens_eff
    if n_pad != n:
        flat = jnp.pad(flat, (0, n_pad - n))                     # pad with index 0 (valid)
    n_rows = n_pad // k
    idx2d = flat.reshape(n_rows, k)                              # row p holds tokens p*k .. p*k+k-1

    # Block-diagonal table so one packed one-hot matmul emits k embeddings/row.
    if k > 1:
        w_big = jnp.zeros((k * c_in, k * d_model), w.dtype)
        for s in range(k):
            w_big = w_big.at[s * c_in:(s + 1) * c_in,
                             s * d_model:(s + 1) * d_model].set(w)
    else:
        w_big = w

    grid = (n_rows // block_rows,)
    out_itemsize = jnp.dtype(out_dtype).itemsize

    # Advisory cost: cheap, memory-bound custom call (index read + table + output write).
    cost = pl.CostEstimate(
        flops=2 * n_rows * (k * c_in) * (k * d_model),
        transcendentals=0,
        bytes_accessed=4 * n_pad + 4 * int(w_big.size) + out_itemsize * n_pad * d_model,
    )

    # VMEM budget: double-buffered output + lane-padded (128-lane) index tiles
    # + double-buffered resident table.  Only raise the scoped limit if a big
    # sweep config actually needs it (keeps v7x's 64 MiB physical in bounds).
    def _pad(v, m):
        return ((v + m - 1) // m) * m
    vmem_bytes = (2 * block_rows * _pad(k * d_model, 128) * out_itemsize
                  + 2 * block_rows * 128 * 4
                  + 2 * _pad(k * c_in, 8) * _pad(k * d_model, 128) * 4)
    compiler_kwargs = dict(dimension_semantics=("parallel",))    # split tiles across TCs
    if vmem_bytes > 24 * 1024 * 1024:
        compiler_kwargs["vmem_limit_bytes"] = min(vmem_bytes + (8 << 20), 60 << 20)

    kernel = functools.partial(_fixed_embedding_kernel, k=k, c_in=c_in)
    out = pl.pallas_call(
        kernel,
        out_shape=jax.ShapeDtypeStruct((n_rows, k * d_model), out_dtype),
        grid_spec=pltpu.PrefetchScalarGridSpec(
            num_scalar_prefetch=0,
            grid=grid,
            in_specs=[
                # per-tile packed indices
                pl.BlockSpec((block_rows, k), lambda i: (i, 0)),
                # full (block-diagonal) table, constant index_map -> stays resident
                pl.BlockSpec((k * c_in, k * d_model), lambda i: (0, 0)),
            ],
            out_specs=pl.BlockSpec((block_rows, k * d_model), lambda i: (i, 0)),
        ),
        compiler_params=pltpu.CompilerParams(**compiler_kwargs),
        cost_estimate=cost,
    )(idx2d, w_big)

    # (n_rows, k*d_model) row-major == (n_pad, d_model) row-major: free reshape.
    out = out.reshape(n_pad, d_model)[:n]
    return out.reshape(*orig_shape, d_model)
    # TODO(synk): .detach() / requires_grad=False is an autograd concept with no
    # Pallas equivalent; the forward lookup above is the full inference semantics.


def _reference_fixed_embedding(x, c_in, d_model):
    w = _build_fixed_table(c_in, d_model)
    return jnp.take(w, x, axis=0)


if __name__ == "__main__":
    key = jax.random.PRNGKey(0)
    k1, k2, k3 = jax.random.split(key, 3)

    # Typical temporal-embedding config: day-of-month-ish table, hidden=32.
    c_in, d_model = 32, 32

    # 1) Small shape (B=2, S=8): exercises the jnp.take fast path.
    x_small = jax.random.randint(k1, (2, 8), 0, c_in, dtype=jnp.int32)
    y_small = jax.block_until_ready(fixed_embedding(x_small, c_in, d_model))
    ref_small = _reference_fixed_embedding(x_small, c_in, d_model)
    assert y_small.shape == (2, 8, d_model)
    assert jnp.allclose(y_small, ref_small, atol=0.0, rtol=0.0)

    # 2) Pallas kernel path with lane-packing (d_model=32 -> 4 tokens per
    #    128-lane output row), 4 grid tiles so the parallel axis can split.
    x_big = jax.random.randint(k2, (4, 512), 0, c_in, dtype=jnp.int32)
    y_big = jax.block_until_ready(
        fixed_embedding(x_big, c_in, d_model, block_tokens=512))
    ref_big = _reference_fixed_embedding(x_big, c_in, d_model)
    assert y_big.shape == (4, 512, d_model)
    assert jnp.allclose(y_big, ref_big, atol=1e-6, rtol=1e-6)

    # 3) Pallas kernel path without packing (d_model already lane-dense).
    c_in2, d_model2 = 24, 128
    x3 = jax.random.randint(k3, (2, 256), 0, c_in2, dtype=jnp.int32)
    y3 = jax.block_until_ready(
        fixed_embedding(x3, c_in2, d_model2, block_tokens=256))
    ref3 = _reference_fixed_embedding(x3, c_in2, d_model2)
    assert y3.shape == (2, 256, d_model2)
    assert jnp.allclose(y3, ref3, atol=1e-6, rtol=1e-6)

    print("KERNEL_OK")
</pallas_src>

<mosaic_0001>
module attributes {stable_mosaic.version = 11 : i64} {
  func.func @_fixed_embedding_kernel(%arg0: i32, %arg1: memref<128x4xi32, #tpu.memory_space<vmem>>, %arg2: memref<128x128xf32, #tpu.memory_space<vmem>>, %arg3: memref<128x128xf32, #tpu.memory_space<vmem>>) attributes {dimension_semantics = [#tpu.dimension_semantics<parallel>], iteration_bounds = array<i64: 4>, scalar_prefetch = 0 : i64, scratch_operands = 0 : i64, tpu.core_type = #tpu.core_type<tc>, window_params = [{transform_indices = @transform_0, window_bounds = array<i64: 128, 4>}, {pipeline_mode = #tpu.pipeline_mode<synchronous>, transform_indices = @transform_1, window_bounds = array<i64: 128, 128>}, {transform_indices = @transform_2, window_bounds = array<i64: 128, 128>}]} {
    %c0 = arith.constant 0 : index
    %c0_0 = arith.constant 0 : index
    %0 = vector.load %arg1[%c0, %c0_0] : memref<128x4xi32, #tpu.memory_space<vmem>>, vector<128x4xi32>
    %1 = tpu.iota {dimensions = array<i32: 1>} : vector<128x128xi32>
    %cst = arith.constant 0.000000e+00 : f32
    %2 = vector.broadcast %cst : f32 to vector<128x128xf32>
    %3 = vector.extract_strided_slice %0 {offsets = [0, 0], sizes = [128, 1], strides = [1, 1]} : vector<128x4xi32> to vector<128x1xi32>
    %c0_i32 = arith.constant 0 : i32
    %4 = vector.broadcast %c0_i32 : i32 to vector<128x1xi32>
    %5 = arith.addi %3, %4 : vector<128x1xi32>
    %6 = vector.broadcast %5 : vector<128x1xi32> to vector<128x128xi32>
    %7 = arith.cmpi eq, %1, %6 : vector<128x128xi32>
    %8 = arith.extui %7 : vector<128x128xi1> to vector<128x128xi32>
    %9 = arith.sitofp %8 : vector<128x128xi32> to vector<128x128xf32>
    %10 = arith.addf %2, %9 : vector<128x128xf32>
    %11 = vector.extract_strided_slice %0 {offsets = [0, 1], sizes = [128, 1], strides = [1, 1]} : vector<128x4xi32> to vector<128x1xi32>
    %c32_i32 = arith.constant 32 : i32
    %12 = vector.broadcast %c32_i32 : i32 to vector<128x1xi32>
    %13 = arith.addi %11, %12 : vector<128x1xi32>
    %14 = vector.broadcast %13 : vector<128x1xi32> to vector<128x128xi32>
    %15 = arith.cmpi eq, %1, %14 : vector<128x128xi32>
    %16 = arith.extui %15 : vector<128x128xi1> to vector<128x128xi32>
    %17 = arith.sitofp %16 : vector<128x128xi32> to vector<128x128xf32>
    %18 = arith.addf %10, %17 : vector<128x128xf32>
    %19 = vector.extract_strided_slice %0 {offsets = [0, 2], sizes = [128, 1], strides = [1, 1]} : vector<128x4xi32> to vector<128x1xi32>
    %c64_i32 = arith.constant 64 : i32
    %20 = vector.broadcast %c64_i32 : i32 to vector<128x1xi32>
    %21 = arith.addi %19, %20 : vector<128x1xi32>
    %22 = vector.broadcast %21 : vector<128x1xi32> to vector<128x128xi32>
    %23 = arith.cmpi eq, %1, %22 : vector<128x128xi32>
    %24 = arith.extui %23 : vector<128x128xi1> to vector<128x128xi32>
    %25 = arith.sitofp %24 : vector<128x128xi32> to vector<128x128xf32>
    %26 = arith.addf %18, %25 : vector<128x128xf32>
    %27 = vector.extract_strided_slice %0 {offsets = [0, 3], sizes = [128, 1], strides = [1, 1]} : vector<128x4xi32> to vector<128x1xi32>
    %c96_i32 = arith.constant 96 : i32
    %28 = vector.broadcast %c96_i32 : i32 to vector<128x1xi32>
    %29 = arith.addi %27, %28 : vector<128x1xi32>
    %30 = vector.broadcast %29 : vector<128x1xi32> to vector<128x128xi32>
    %31 = arith.cmpi eq, %1, %30 : vector<128x128xi32>
    %32 = arith.extui %31 : vector<128x128xi1> to vector<128x128xi32>
    %33 = arith.sitofp %32 : vector<128x128xi32> to vector<128x128xf32>
    %34 = arith.addf %26, %33 : vector<128x128xf32>
    %c0_1 = arith.constant 0 : index
    %c0_2 = arith.constant 0 : index
    %35 = vector.load %arg2[%c0_1, %c0_2] : memref<128x128xf32, #tpu.memory_space<vmem>>, vector<128x128xf32>
    %cst_3 = arith.constant dense<0.000000e+00> : vector<128x128xf32>
    %36 = tpu.matmul %34, %35, %cst_3 {dimension_numbers = #tpu.dot_dimension_numbers<[1], [0], [0], [1], [0, 0, 1, 1], [], []>, precision = #tpu.contract_precision<fp32>} : vector<128x128xf32>, vector<128x128xf32>, vector<128x128xf32> -> vector<128x128xf32>
    %c0_4 = arith.constant 0 : index
    %c0_5 = arith.constant 0 : index
    %37 = vector.load %arg3[%c0_4, %c0_5] : memref<128x128xf32, #tpu.memory_space<vmem>>, vector<128x128xf32>
    tpu.vector_store %arg3[%c0_4, %c0_5], %36 {strides = array<i32>} : memref<128x128xf32, #tpu.memory_space<vmem>>, vector<128x128xf32>,
    return
  }
  func.func @transform_0(%arg0: i32) -> (i32, i32) {
    %c0_i32 = arith.constant 0 : i32
    %c0_i32_0 = arith.constant 0 : i32
    return %arg0, %c0_i32 : i32, i32
  }
  func.func @transform_1(%arg0: i32) -> (i32, i32) {
    %c0_i32 = arith.constant 0 : i32
    %c0_i32_0 = arith.constant 0 : i32
    %c0_i32_1 = arith.constant 0 : i32
    return %c0_i32, %c0_i32_0 : i32, i32
  }
  func.func @transform_2(%arg0: i32) -> (i32, i32) {
    %c0_i32 = arith.constant 0 : i32
    %c0_i32_0 = arith.constant 0 : i32
    return %arg0, %c0_i32 : i32, i32
  }
}

</mosaic_0001>

<bundles_post_ra>
// kernel: tpu_custom_call.1
= control target key start
LH: loop header
LB: loop body
LE: loop exit
PB: predicated region body
PF: predicated region fallthrough
CT: control target
= control target key end

     0   :  { %7 = vsyncpa [#allocation3], 0  ;;  %s4190_s0 = inlined_call_operand.vmem [shape: s32[512,4], index: 0, kind: input, shape index: {}]   ;;  %s4191_s1 = inlined_call_operand.vmem [shape: f32[128,128], index: 1, kind: input, shape index: {}]   ;;  %s4192_s2 = inlined_call_operand.hbm [shape: f32[512,128], index: 2, kind: output, shape index: {}]  }
   0x1   :  { %9 = vsyncpa [#allocation3 + $0x1], 0  ;;  %s3107_s9 = smov 0   ;;  %s3109_s10 = smov 0  }
   0x2   :  { %s3111_s11 = smov 0   ;;  %s3113_s12 = smov 0  }
   0x3 LB: > { %s3128_s13 = sadd.s32 4294967295, %s3082_s12   ;;  %s2053_s14 = sadd.s32 4294967294, %s3082_s12   ;;  %s3082_s12 = sphi %s3113_s12, %s4266_s12   ;;  %s3078_s11 = sphi %s3111_s11, %s4265_s11   ;;  %s3074_s10 = sphi %s3109_s10, %s4264_s10   ;;  %s3070_s9 = sphi %s3107_s9, %s4263_s9  }
   0x4   : > { %s3132_s15 = sadd.s32 1, %s3082_s12   ;;  %s69_s16 = sadd.s32 1, %s3078_s11 }
   0x5   : > { %s66_s17 = ssub.s32 %s3082_s12, %s3132_s15  ;;  %p79_p0 = scmp.ne.s32.totalorder %s3078_s11, %s3074_s10 }
   0x6   : > { %p67_p1 = scmp.eq.s32.totalorder %s66_s17, 0  ;;  %p80_p2 = scmp.eq.s32.totalorder %s3128_s13, 3 }
   0x7   : > { %p85_p3 = scmp.ne.s32.totalorder %s3074_s10, %s3070_s9  ;;  %p86_p4 = scmp.eq.s32.totalorder %s2053_s14, 3 }
   0x8   : > { %s3143_s18 = scalar_select %p67_p1, %s3078_s11, %s69_s16  }
   0x9   : > { %p3145_p5 = por %p80_p2, %p79_p0  ;;  %p3149_p6 = por %p86_p4, %p85_p3 }
   0xa   : > { %p2056_p7 = scmp.ge.s32.totalorder %s3082_s12, 1  ;;  %p116_p8 = scmp.lt.s32.totalorder %s3082_s12, 5 }
   0xc   : > { %p117_p9 = pnand %p2056_p7, %p116_p8 }
   0xe   : > { %120 = sbr.rel (%p117_p9) target bundleno = 658 (0x292), region = 28 }
  0x15   : > { %s2058_s21 = sshll.u32 %s3128_s13, 4  ;;  %v3084_v0 = vmov 0   ;;  %v3085_v5 = vmov 1   ;;  %v3086_v8 = vmov 2   ;;  %v4203_v9 = vmov 3   ;;  %v3216_v31 = vld [vmem:[%s4191_s1] sm:$0xff] }
  0x16   : > { %2977 = vset.pattern.permute.xlu1 %v3084_v0  ;;  %2976 = vset.pattern.permute.xlu0 %v3084_v0  ;;  %p139_p10 = scmp.lt.s32.totalorder %s2058_s21, 63  ;;  %v3221_v32 = vld [vmem:[%s4191_s1 + $0x8] sm:$0xff]  ;;  %v676_v34 = vand.u32 4294901760, %v3216_v31  ;;  %v3239_v38 = vld [vmem:[%s4191_s1 + $0x10] sm:$0xff]  ;;  %v3244_v39 = vld [vmem:[%s4191_s1 + $0x18] sm:$0xff]  ;;  %s2129_s23 = sshll.u32 %s3128_s13, 11 }
  0x17   : > { %v679_v35 = vand.u32 4294901760, %v3221_v32  ;;  %v682_v41 = vand.u32 4294901760, %v3239_v38  ;;  %v685_v42 = vand.u32 4294901760, %v3244_v39  ;;  %v3267_v45 = vld [vmem:[%s4191_s1 + $0x20] sm:$0xff]  ;;  %v3272_v46 = vld [vmem:[%s4191_s1 + $0x28] sm:$0xff]  ;;  %v3295_v53 = vld [vmem:[%s4191_s1 + $0x30] sm:$0xff]  ;;  %s4141_s28 = scalar_lea.hbm %s4192_s2, %s2129_s23 }
  0x18   : > { %s4268_s21 = smov (!%p139_p10, %s2058_s21), 63  ;;  %v688_v49 = vand.u32 4294901760, %v3267_v45  ;;  %v691_v50 = vand.u32 4294901760, %v3272_v46  ;;  %v3300_v54 = vld [vmem:[%s4191_s1 + $0x38] sm:$0xff]  ;;  %v4202_v56 = vand.u32 4294901760, %v3295_v53  ;;  %v3322_v61 = vld [vmem:[%s4191_s1 + $0x40] sm:$0xff] }
  0x19   : > { %s2059_s22 = sshll.u32 %s4268_s21, 3  ;;  %v3233_v36 = vpack.c.bf16 %v679_v35, %v676_v34  ;;  %v3260_v43 = vpack.c.bf16 %v685_v42, %v682_v41  ;;  %v4201_v57 = vand.u32 4294901760, %v3300_v54  ;;  %v3327_v62 = vld [vmem:[%s4191_s1 + $0x48] sm:$0xff]  ;;  %v4200_v63 = vand.u32 4294901760, %v3322_v61  ;;  %s3089_s30 = smov [#allocation2]  }
  0x1a   : > { %s3161_s25 = scalar_lea.vmem %s4190_s0, %s2059_s22  ;;  %v3288_v51 = vpack.c.bf16 %v691_v50, %v688_v49  ;;  %s3024_s3 = sshll.u32 %s3089_s30, 4  ;;  %s3025_s3 = int_to_ptr.vmem [resolvable:$false] %s3024_s3 }
  0x1b   : > { %v3164_v1 = vld [vmem:[%s3161_s25 + $0x8] sm:$0xff]  ;;  %v145_v2 = vld [vmem:[%s3161_s25] sm:$0xff]  ;;  %v147_v11 = vld [vmem:[%s3161_s25 + $0x10] sm:$0xff]  ;;  %2755 = vmatprep.subr.bf16.mxu0 %v3233_v36  ;;  %2659 = vmatprep.subr.bf16.mxu1 %v3233_v36  ;;  %4226 = vst [vmem:[#allocation5_spill] sm:$0xff] %v3260_v43  ;;  %v3315_v59 = vpack.c.bf16 %v4201_v57, %v4202_v56  ;;  %s3026_s4 = scalar_lea.vmem %s3025_s3, 4096 }
  0x1c   : > { %167 = vperm.xlu1 %2977, %v3164_v1   ;;  %164 = vperm.xlu0 %2976, %v145_v2   ;;  %v276_v3 = vadd.s32 32, %v3164_v1  ;;  %v275_v4 = vadd.s32 32, %v145_v2  ;;  %v403_v6 = vadd.s32 64, %v145_v2  ;;  %v531_v7 = vadd.s32 96, %v145_v2  ;;  %v3177_v13 = vld [vmem:[%s3161_s25 + $0x18] sm:$0xff]  ;;  %v3182_v16 = vld [vmem:[%s3161_s25 + $0x20] sm:$0xff] }
  0x1d   : > { %v532_v10 = vadd.s32 96, %v3164_v1  ;;  %v533_v12 = vadd.s32 96, %v147_v11  ;;  %v277_v14 = vadd.s32 32, %v147_v11  ;;  %v534_v15 = vadd.s32 96, %v3177_v13  ;;  %v3186_v18 = vld [vmem:[%s3161_s25 + $0x28] sm:$0xff]  ;;  %v3193_v21 = vld [vmem:[%s3161_s25 + $0x30] sm:$0xff]  ;;  %2757 = vmatpush3.bf16.msra.mxu0 %v3233_v36  ;;  %2661 = vmatpush3.bf16.msra.mxu1 %v3233_v36 }
  0x1e   : > { %v535_v17 = vadd.s32 96, %v3182_v16  ;;  %v278_v19 = vadd.s32 32, %v3177_v13  ;;  %v536_v20 = vadd.s32 96, %v3186_v18  ;;  %v537_v22 = vadd.s32 96, %v3193_v21  ;;  %v3198_v24 = vld [vmem:[%s3161_s25 + $0x38] sm:$0xff]  ;;  %v3203_v26 = vld [vmem:[%s3161_s25 + $0x40] sm:$0xff]  ;;  %2759 = vmatprep.subr.bf16.mxu0 %v3260_v43  ;;  %2663 = vmatprep.subr.bf16.mxu1 %v3260_v43 }
  0x1f   : > { %v405_v23 = vadd.s32 64, %v147_v11  ;;  %v538_v25 = vadd.s32 96, %v3198_v24  ;;  %v539_v27 = vadd.s32 96, %v3203_v26  ;;  %v3208_v28 = vld [vmem:[%s3161_s25 + $0x48] sm:$0xff]  ;;  %v279_v29 = vadd.s32 32, %v3182_v16  ;;  %v3224_v33 = vld [vmem:[%s3161_s25 + $0x50] sm:$0xff] }
  0x20   : > { %2979 = vset.pattern.permute.xlu1 %v3085_v5  ;;  %2978 = vset.pattern.permute.xlu0 %v3085_v5  ;;  %v540_v30 = vadd.s32 96, %v3208_v28  ;;  %v541_v37 = vadd.s32 96, %v3224_v33  ;;  %v3247_v40 = vld [vmem:[%s3161_s25 + $0x58] sm:$0xff]  ;;  %v280_v47 = vadd.s32 32, %v3186_v18  ;;  %v3276_v48 = vld [vmem:[%s3161_s25 + $0x60] sm:$0xff]  ;;  %4227 = vst [vmem:[#allocation6_spill] sm:$0xff] %v3288_v51 }
  0x21   : > { %295 = vperm.xlu1 %2979, %v276_v3   ;;  %292 = vperm.xlu0 %2978, %v275_v4   ;;  %v542_v44 = vadd.s32 96, %v3247_v40  ;;  %v543_v52 = vadd.s32 96, %v3276_v48  ;;  %v3303_v55 = vld [vmem:[%s3161_s25 + $0x68] sm:$0xff]  ;;  %v407_v58 = vadd.s32 64, %v3182_v16  ;;  %4228 = vst [vmem:[#allocation7_spill] sm:$0xff] %v3315_v59  ;;  %v4199_v2 = vand.u32 4294901760, %v3327_v62 }
  0x22   : > { %2761 = vmatpush3.bf16.msra.mxu0 %v3260_v43  ;;  %2665 = vmatpush3.bf16.msra.mxu1 %v3260_v43  ;;  %v544_v60 = vadd.s32 96, %v3303_v55  ;;  %v3345_v4 = vld [vmem:[%s4191_s1 + $0x50] sm:$0xff] }
  0x23   : > { %2763 = vmatprep.subr.bf16.mxu0 %v3288_v51  ;;  %2667 = vmatprep.subr.bf16.mxu1 %v3288_v51  ;;  %v3339_v3 = vpack.c.bf16 %v4199_v2, %v4200_v63 }
  0x25   : > { %2980 = vset.pattern.permute.xlu1 %v3086_v8  ;;  %2983 = vset.pattern.permute.xlu0 %v4203_v9  ;;  %4229 = vst [vmem:[#allocation8_spill] sm:$0xff] %v3339_v3 }
  0x26   : > { %420 = vperm.xlu1 %2980, %v403_v6   ;;  %548 = vperm.xlu0 %2983, %v531_v7   ;;  %v3350_v6 = vld [vmem:[%s4191_s1 + $0x58] sm:$0xff]  ;;  %v404_v7 = vadd.s32 64, %v3164_v1  ;;  %v281_v1 = vadd.s32 32, %v3193_v21 }
  0x27   : > { %2765 = vmatpush3.bf16.msra.mxu0 %v3288_v51  ;;  %2669 = vmatpush3.bf16.msra.mxu1 %v3288_v51 }
  0x28   : > { %2767 = vmatprep.subr.bf16.mxu0 %v3315_v59  ;;  %2671 = vmatprep.subr.bf16.mxu1 %v3315_v59 }
  0x2a   : > { %2981 = vset.pattern.permute.xlu1 %v3084_v0  ;;  %551 = vperm.xlu0 %2983, %v532_v10   ;;  %v4198_v10 = vand.u32 4294901760, %v3345_v4 }
  0x2b   : > { %170 = vperm.xlu1 %2981, %v147_v11   ;;  %2769 = vmatpush3.bf16.msra.mxu0 %v3315_v59  ;;  %v4197_v11 = vand.u32 4294901760, %v3350_v6 }
  0x2c   : > { %2673 = vmatpush3.bf16.msra.mxu1 %v3315_v59  ;;  %2771 = vmatprep.subr.bf16.mxu0 %v3339_v3 }
  0x2d   : > { %2675 = vmatprep.subr.bf16.mxu1 %v3339_v3 }
  0x2e   : > { %554 = vperm.xlu0 %2983, %v533_v12   ;;  %v3364_v12 = vpack.c.bf16 %v4197_v11, %v4198_v10  ;;  %v3518_v10 = vsub.f32 %v3216_v31, %v676_v34 }
  0x2f   : > { %2982 = vset.pattern.permute.xlu1 %v3085_v5  ;;  %2773 = vmatpush3.bf16.msra.mxu0 %v3339_v3 }
  0x30   : > { %298 = vperm.xlu1 %2982, %v277_v14   ;;  %4230 = vst [vmem:[#allocation9_spill] sm:$0xff] %v3364_v12  ;;  %2677 = vmatpush3.bf16.msra.mxu1 %v3339_v3  ;;  %v3372_v14 = vld [vmem:[%s4191_s1 + $0x60] sm:$0xff]  ;;  %v919_v63 = vand.u32 4294901760, %v3518_v10 }
  0x31   : > { %2775 = vmatprep.subr.bf16.mxu0 %v3364_v12  ;;  %2679 = vmatprep.subr.bf16.mxu1 %v3364_v12 }
  0x32   : > { %557 = vperm.xlu0 %2983, %v534_v15   ;;  %v3377_v15 = vld [vmem:[%s4191_s1 + $0x68] sm:$0xff] }
  0x33   : > { %2777 = vmatpush3.bf16.msra.mxu0 %v3364_v12 }
  0x34   : > { %2984 = vset.pattern.permute.xlu1 %v3084_v0  ;;  %2681 = vmatpush3.bf16.msra.mxu1 %v3364_v12 }
  0x35   : > { %173 = vperm.xlu1 %2984, %v3177_v13  }
  0x36   : > { %560 = vperm.xlu0 %2983, %v535_v17   ;;  %v4196_v17 = vand.u32 4294901760, %v3372_v14 }
  0x39   : > { %2985 = vset.pattern.permute.xlu1 %v3085_v5 }
  0x3a   : > { %301 = vperm.xlu1 %2985, %v278_v19   ;;  %563 = vperm.xlu0 %2983, %v536_v20   ;;  %v4195_v19 = vand.u32 4294901760, %v3377_v15 }
  0x3c   : > { %v3390_v20 = vpack.c.bf16 %v4195_v19, %v4196_v17  ;;  %v159_v17 = vld [vmem:[%s3161_s25 + $0x70] sm:$0xff] }
  0x3e   : > { %2986 = vset.pattern.permute.xlu1 %v3086_v8  ;;  %566 = vperm.xlu0 %2983, %v537_v22   ;;  %4231 = vst [vmem:[#allocation10_spill] sm:$0xff] %v3390_v20  ;;  %v3401_v22 = vld [vmem:[%s4191_s1 + $0x78] sm:$0xff] }
  0x3f   : > { %426 = vperm.xlu1 %2986, %v405_v23   ;;  %v408_v23 = vadd.s32 64, %v3186_v18  ;;  %2779 = vmatprep.subr.bf16.mxu0 %v3390_v20 }
  0x40   : > { %2781 = vmatpush3.bf16.msra.mxu0 %v3390_v20  ;;  %2683 = vmatprep.subr.bf16.mxu1 %v3390_v20 }
  0x41   : > { %2685 = vmatpush3.bf16.msra.mxu1 %v3390_v20 }
  0x42   : > { %569 = vperm.xlu0 %2983, %v538_v25  }
  0x43   : > { %2987 = vset.pattern.permute.xlu1 %v3084_v0 }
  0x44   : > { %176 = vperm.xlu1 %2987, %v3182_v16   ;;  %v406_v16 = vadd.s32 64, %v3177_v13  ;;  %v3396_v13 = vld [vmem:[%s4191_s1 + $0x70] sm:$0xff] }
  0x45   : > { %v4194_v25 = vand.u32 4294901760, %v3396_v13 }
  0x46   : > { %572 = vperm.xlu0 %2983, %v539_v27   ;;  %v4193_v27 = vand.u32 4294901760, %v3401_v22 }
  0x48   : > { %2988 = vset.pattern.permute.xlu1 %v3085_v5 }
  0x49   : > { %304 = vperm.xlu1 %2988, %v279_v29   ;;  %v3413_v29 = vpack.c.bf16 %v4193_v27, %v4194_v25  ;;  %v415_v27 = vadd.s32 64, %v3276_v48 }
  0x4a   : > { %575 = vperm.xlu0 %2983, %v540_v30   ;;  %v282_v30 = vadd.s32 32, %v3198_v24 }
  0x4b   : > { %4232 = vst [vmem:[#allocation11_spill] sm:$0xff] %v3413_v29  ;;  %2783 = vmatprep.subr.bf16.mxu0 %v3413_v29  ;;  %2687 = vmatprep.subr.bf16.mxu1 %v3413_v29 }
  0x4c   : > { %2785 = vmatpush3.bf16.msra.mxu0 %v3413_v29  ;;  %2689 = vmatpush3.bf16.msra.mxu1 %v3413_v29 }
  0x4d   : > { %2989 = vset.pattern.permute.xlu1 %v3084_v0 }
  0x4e   : > { %179 = vperm.xlu1 %2989, %v3186_v18   ;;  %578 = vperm.xlu0 %2983, %v541_v37   ;;  %v410_v18 = vadd.s32 64, %v3198_v24  ;;  %v412_v37 = vadd.s32 64, %v3208_v28 }
  0x52   : > { %2990 = vset.pattern.permute.xlu1 %v3085_v5  ;;  %581 = vperm.xlu0 %2983, %v542_v44   ;;  %v409_v44 = vadd.s32 64, %v3193_v21 }
  0x53   : > { %307 = vperm.xlu1 %2990, %v280_v47   ;;  %v416_v47 = vadd.s32 64, %v3303_v55 }
  0x56   : > { %584 = vperm.xlu0 %2983, %v543_v52   ;;  %v3431_v52 = vld [vmem:[%s3161_s25 + $0x78] sm:$0xff]  ;;  %s135_s25 = sand.u32 1, %s3074_s10  }
  0x57   : > { %2991 = vset.pattern.permute.xlu1 %v3086_v8  ;;  %s2057_s21 = sshll.u32 %s135_s25, 7  ;;  %s4149_s13 = scalar_lea.sflag [#allocation3], %s135_s25 }
  0x58   : > { %432 = vperm.xlu1 %2991, %v407_v58   ;;  %v283_v58 = vadd.s32 32, %v3203_v26  ;;  %s4120_s22 = scalar_lea.vmem [#allocation2], %s2057_s21 }
  0x59   : > { %s1991_s24 = sshll.u32 %s4120_s22, 4  ;;  %s4143_s24 = int_to_ptr.vmem [resolvable:$true] %s1991_s24 }
  0x5a   : > { %587 = vperm.xlu0 %2983, %v544_v60   ;;  %v284_v60 = vadd.s32 32, %v3208_v28  ;;  %s3020_s29 = scalar_lea.vmem %s4143_s24, 2048  ;;  %p3027_p0 = scmp.lt.s32.totalorder %s4143_s24, %s3025_s3 }
  0x5b   : > { %p3021_p11 = scmp.ne.s32.totalorder %s4143_s24, %s3020_s29  ;;  %p3028_p1 = scmp.lt.s32.totalorder %s3026_s4, %s3020_s29 }
  0x5c   : > { %2992 = vset.pattern.permute.xlu1 %v3084_v0 }
  0x5d   : > { %182 = vperm.xlu1 %2992, %v3193_v21   ;;  %v418_v21 = vadd.s32 64, %v3431_v52  ;;  %p3022_p12 = pnand %p3021_p11, %p3145_p5  ;;  %p3029_p2 = por %p3028_p1, %p3027_p0 }
  0x5e   : > { %3016 = vset.pattern.permute.xlu0 %v3086_v8 }
  0x5f   : > { %423 = vperm.xlu0 %3016, %v404_v7   ;;  %v411_v7 = vadd.s32 64, %v3203_v26  ;;  %p3023_p13 = pneg %p3022_p12 }
  0x61   : > { %2993 = vset.pattern.permute.xlu1 %v3085_v5  ;;  %p3030_p3 = pnand %p3029_p2, %p3023_p13 }
  0x62   : > { %310 = vperm.xlu1 %2993, %v281_v1   ;;  %v285_v1 = vadd.s32 32, %v3224_v33 }
  0x63   : > { %429 = vperm.xlu0 %3016, %v406_v16   ;;  %v286_v16 = vadd.s32 32, %v3247_v40 }
  0x66   : > { %2994 = vset.pattern.permute.xlu1 %v3084_v0 }
  0x67   : > { %185 = vperm.xlu1 %2994, %v3198_v24   ;;  %435 = vperm.xlu0 %3016, %v408_v23   ;;  %v414_v24 = vadd.s32 64, %v3247_v40 }
  0x6b   : > { %2995 = vset.pattern.permute.xlu1 %v3085_v5  ;;  %441 = vperm.xlu0 %3016, %v410_v18  }
  0x6c   : > { %313 = vperm.xlu1 %2995, %v282_v30   ;;  %v413_v30 = vadd.s32 64, %v3224_v33 }
  0x6f   : > { %447 = vperm.xlu0 %3016, %v412_v37  }
  0x70   : > { %2996 = vset.pattern.permute.xlu1 %v3086_v8 }
  0x71   : > { %438 = vperm.xlu1 %2996, %v409_v44  }
  0x73   : > { %453 = vperm.xlu0 %3016, %v414_v24   ;;  %v3088_v24 = vmov 0.0  }
  0x75   : > { %2997 = vset.pattern.permute.xlu1 %v3084_v0 }
  0x76   : > { %188 = vperm.xlu1 %2997, %v3203_v26  }
  0x77   : > { %459 = vperm.xlu0 %3016, %v416_v47  }
  0x7a   : > { %2998 = vset.pattern.permute.xlu1 %v3085_v5 }
  0x7b   : > { %316 = vperm.xlu1 %2998, %v283_v58   ;;  %465 = vperm.xlu0 %3016, %v418_v21  }
  0x7f   : > { %2999 = vset.pattern.permute.xlu1 %v3084_v0  ;;  %3019 = vset.pattern.permute.xlu0 %v4203_v9 }
  0x80   : > { %191 = vperm.xlu1 %2999, %v3208_v28   ;;  %v161_v28 = vlaneseq }
  0x82   : > { %v3454_v18 = vand.u32 127, %v161_v28 }
  0x84   : > { %3000 = vset.pattern.permute.xlu1 %v3085_v5 }
  0x85   : > { %319 = vperm.xlu1 %3000, %v284_v60  }
  0x89   : > { %3001 = vset.pattern.permute.xlu1 %v3086_v8 }
  0x8a   : > { %444 = vperm.xlu1 %3001, %v411_v7  }
  0x8e   : > { %3002 = vset.pattern.permute.xlu1 %v3084_v0 }
  0x8f   : > { %194 = vperm.xlu1 %3002, %v3224_v33  }
  0x93   : > { %3003 = vset.pattern.permute.xlu1 %v3085_v5 }
  0x94   : > { %322 = vperm.xlu1 %3003, %v285_v1  }
  0x98   : > { %3004 = vset.pattern.permute.xlu1 %v3084_v0 }
  0x99   : > { %197 = vperm.xlu1 %3004, %v3247_v40  }
  0x9b   : > { %v3452_v26 = vpop.permute.xlu1 %167  ;;  %v165_v23 = vpop.permute.xlu0 %164 }
  0x9c   : > { %vm211_vm0 = vcmp.eq.s32.totalorder %v3454_v18, %v165_v23  ;;  %vm212_vm9 = vcmp.eq.s32.totalorder %v3454_v18, %v3452_v26  ;;  %v545_v26 = vadd.s32 96, %v159_v17 }
  0x9d   : > { %3005 = vset.pattern.permute.xlu1 %v3085_v5  ;;  %v2060_v47 = vsel %vm211_vm0, 1.0, %v3088_v24 }
  0x9e   : > { %325 = vperm.xlu1 %3005, %v286_v16   ;;  %v287_v16 = vadd.s32 32, %v3276_v48 }
  0xa0   : > { %v3459_v37 = vpop.permute.xlu1 %295  ;;  %v293_v44 = vpop.permute.xlu0 %292 }
  0xa1   : > { %vm339_vm1 = vcmp.eq.s32.totalorder %v3454_v18, %v293_v44  ;;  %vm340_vm8 = vcmp.eq.s32.totalorder %v3454_v18, %v3459_v37  ;;  %v2061_v37 = vsel %vm212_vm9, 1.0, %v3088_v24 }
  0xa2   : > { %3006 = vset.pattern.permute.xlu1 %v3086_v8  ;;  %v2076_v40 = vsel %vm339_vm1, 1.0, %v3088_v24 }
  0xa3   : > { %450 = vperm.xlu1 %3006, %v413_v30   ;;  %v387_v58 = vadd.f32 %v2076_v40, %v2060_v47 }
  0xa5   : > { %v421_v21 = vpop.permute.xlu1 %420  ;;  %v549_v60 = vpop.permute.xlu0 %548 }
  0xa6   : > { %vm467_vm2 = vcmp.eq.s32.totalorder %v3454_v18, %v421_v21  ;;  %vm595_vm3 = vcmp.eq.s32.totalorder %v3454_v18, %v549_v60 }
  0xa7   : > { %v2092_v33 = vsel %vm467_vm2, 1.0, %v3088_v24  ;;  %v2108_v7 = vsel %vm595_vm3, 1.0, %v3088_v24  ;;  %3007 = vset.pattern.permute.xlu1 %v3084_v0 }
  0xa8   : > { %v515_v1 = vadd.f32 %v2092_v33, %v387_v58  ;;  %200 = vperm.xlu1 %3007, %v3276_v48  }
  0xa9   : > { %v3471_v28 = vpop.permute.xlu0 %551 }
  0xaa   : > { %v643_v23 = vadd.f32 %v2108_v7, %v515_v1  ;;  %v171_v30 = vpop.permute.xlu1 %170  ;;  %v288_v7 = vadd.s32 32, %v3303_v55  ;;  %vm596_vm10 = vcmp.eq.s32.totalorder %v3454_v18, %v3471_v28  ;;  %v3571_v28 = vsub.f32 %v3239_v38, %v682_v41 }
  0xab   : > { %vm213_vm5 = vcmp.eq.s32.totalorder %v3454_v18, %v171_v30  ;;  %v3523_v30 = vsub.f32 %v3221_v32, %v679_v35  ;;  %v920_v32 = vsub.f32 %v3518_v10, %v919_v63  ;;  %v290_v35 = vadd.s32 32, %v3431_v52 }
  0xac   : > { %v3474_v44 = vand.u32 4294901760, %v643_v23  ;;  %3008 = vset.pattern.permute.xlu1 %v3085_v5  ;;  %v2062_v11 = vsel %vm213_vm5, 1.0, %v3088_v24  ;;  %v3594_v38 = vsub.f32 %v3267_v45, %v688_v49 }
  0xad   : > { %328 = vperm.xlu1 %3008, %v287_v16   ;;  %v555_v47 = vpop.permute.xlu0 %554  ;;  %v926_v57 = vand.u32 4294901760, %v3523_v30 }
  0xae   : > { %4233 = vst [vmem:[#allocation12_spill] sm:$0xff] %v3474_v44  ;;  %v3478_v40 = vsub.f32 %v643_v23, %v3474_v44  ;;  %vm597_vm7 = vcmp.eq.s32.totalorder %v3454_v18, %v555_v47 }
  0xaf   : > { %v299_v21 = vpop.permute.xlu1 %298  ;;  %v2110_v9 = vsel %vm597_vm7, 1.0, %v3088_v24  ;;  %v3532_v31 = vpack.c.bf16 %v926_v57, %v919_v63  ;;  %v927_v34 = vsub.f32 %v3523_v30, %v926_v57 }
  0xb0   : > { %4234 = vst [vmem:[#allocation13_spill] sm:$0xff] %v3478_v40  ;;  %v758_v58 = vand.u32 4294901760, %v3478_v40  ;;  %vm341_vm4 = vcmp.eq.s32.totalorder %v3454_v18, %v299_v21 }
  0xb1   : > { %3009 = vset.pattern.permute.xlu1 %v3084_v0  ;;  %v3482_v60 = vpop.permute.xlu0 %557  ;;  %2787 = vmatprep.subr.bf16.mxu0 %v3532_v31 }
  0xb2   : > { %203 = vperm.xlu1 %3009, %v3303_v55   ;;  %2522 = vmatprep.mubr.f32.mxu0 %v758_v58  ;;  %v759_v33 = vsub.f32 %v3478_v40, %v758_v58  ;;  %vm598_vm14 = vcmp.eq.s32.totalorder %v3454_v18, %v3482_v60  ;;  %v4241_v40 = vand.u32 4294901760, %v3322_v61 }
  0xb4   : > { %v3487_v1 = vpop.permute.xlu1 %173  ;;  %v760_v16 = vand.u32 4294901760, %v759_v33  ;;  %v3681_v29 = vsub.f32 %v3322_v61, %v4241_v40 }
  0xb5   : > { %v3489_v23 = vpop.permute.xlu0 %560  ;;  %vm214_vm15 = vcmp.eq.s32.totalorder %v3454_v18, %v3487_v1 }
  0xb6   : > { %3010 = vset.pattern.permute.xlu1 %v3085_v5  ;;  %2354 = vmatprep.mubr.f32.mxu1 %v760_v16  ;;  %vm599_vm0 = vcmp.eq.s32.totalorder %v3454_v18, %v3489_v23  ;;  %v2063_v1 = vsel %vm214_vm15, 1.0, %v3088_v24  ;;  %v975_v43 = vand.u32 4294901760, %v3681_v29 }
  0xb7   : > { %331 = vperm.xlu1 %3010, %v288_v7   ;;  %v289_v7 = vadd.s32 32, %v159_v17 }
  0xb9   : > { %v3493_v25 = vpop.permute.xlu1 %301  ;;  %v3495_v19 = vpop.permute.xlu0 %563 }
  0xba   : > { %vm342_vm12 = vcmp.eq.s32.totalorder %v3454_v18, %v3493_v25  ;;  %vm600_vm1 = vcmp.eq.s32.totalorder %v3454_v18, %v3495_v19 }
  0xbb   : > { %3011 = vset.pattern.permute.xlu1 %v3086_v8  ;;  %v2079_v41 = vsel %vm342_vm12, 1.0, %v3088_v24 }
  0xbc   : > { %456 = vperm.xlu1 %3011, %v415_v27   ;;  %v2078_v27 = vsel %vm341_vm4, 1.0, %v3088_v24 }
  0xbd   : > { %v3498_v58 = vpop.permute.xlu0 %566 }
  0xbe   : > { %v427_v55 = vpop.permute.xlu1 %426  ;;  %vm601_vm3 = vcmp.eq.s32.totalorder %v3454_v18, %v3498_v58 }
  0xbf   : > { %vm469_vm6 = vcmp.eq.s32.totalorder %v3454_v18, %v427_v55  ;;  %v389_v55 = vadd.f32 %v2078_v27, %v2062_v11  ;;  %v921_v11 = vand.u32 4294901760, %v920_v32  ;;  %v546_v32 = vadd.s32 96, %v3431_v52 }
  0xc0   : > { %3012 = vset.pattern.permute.xlu1 %v3084_v0  ;;  %v2094_v21 = vsel %vm469_vm6, 1.0, %v3088_v24  ;;  %v3660_v19 = vsel %vm601_vm3, 1.0, %v3088_v24 }
  0xc1   : > { %206 = vperm.xlu1 %3012, %v159_v17   ;;  %v3503_v33 = vpop.permute.xlu0 %569  ;;  %v517_v56 = vadd.f32 %v2094_v21, %v389_v55  ;;  %v928_v55 = vand.u32 4294901760, %v927_v34 }
  0xc2   : > { %vm602_vm4 = vcmp.eq.s32.totalorder %v3454_v18, %v3503_v33 }
  0xc3   : > { %v3507_v48 = vpop.permute.xlu1 %176  ;;  %v645_v47 = vadd.f32 %v2110_v9, %v517_v56  ;;  %v417_v9 = vadd.s32 64, %v159_v17  ;;  %v2077_v56 = vsel %vm340_vm8, 1.0, %v3088_v24 }
  0xc4   : > { %vm215_vm13 = vcmp.eq.s32.totalorder %v3454_v18, %v3507_v48  ;;  %v388_v17 = vadd.f32 %v2077_v56, %v2061_v37  ;;  %v4239_v37 = vand.u32 4294901760, %v3295_v53 }
  0xc5   : > { %3013 = vset.pattern.permute.xlu1 %v3085_v5  ;;  %v3511_v16 = vpop.permute.xlu0 %572  ;;  %v3550_v57 = vand.u32 4294901760, %v645_v47 }
  0xc6   : > { %334 = vperm.xlu1 %3013, %v289_v7  }
  0xc7   : > { %4235 = vst [vmem:[#allocation14_spill] sm:$0xff] %v3550_v57  ;;  %v3582_v34 = vsub.f32 %v645_v47, %v3550_v57 }
  0xc8   : > { %v305_v2 = vpop.permute.xlu1 %304 }
  0xc9   : > { %v3528_v7 = vpop.permute.xlu0 %575  ;;  %vm343_vm11 = vcmp.eq.s32.totalorder %v3454_v18, %v305_v2  ;;  %v3576_v2 = vsub.f32 %v3244_v39, %v685_v42  ;;  %v3599_v39 = vsub.f32 %v3272_v46, %v691_v50  ;;  %v2064_v42 = vsel %vm215_vm13, 1.0, %v3088_v24 }
  0xca   : > { %3014 = vset.pattern.permute.xlu1 %v3084_v0  ;;  %v3546_v0 = vpack.c.bf16 %v928_v55, %v921_v11  ;;  %v933_v46 = vand.u32 4294901760, %v3571_v28  ;;  %v4237_v11 = vmov 3   ;;  %v4207_v48 = vand.u32 4294901760, %v3582_v34 }
  0xcb   : > { %209 = vperm.xlu1 %3014, %v3431_v52   ;;  %v3579_v52 = vsel %vm596_vm10, 1.0, %v3088_v24  ;;  %v940_v50 = vand.u32 4294901760, %v3576_v2  ;;  %v954_v56 = vand.u32 4294901760, %v3599_v39 }
  0xcc   : > { %2691 = vmatprep.subr.bf16.mxu1 %v3546_v0  ;;  %v934_v60 = vsub.f32 %v3571_v28, %v933_v46  ;;  %v3669_v33 = vsub.f32 %v3582_v34, %v4207_v48 }
  0xcd   : > { %v3539_v27 = vpop.permute.xlu1 %179  ;;  %v3541_v21 = vpop.permute.xlu0 %578  ;;  %v955_v58 = vsub.f32 %v3599_v39, %v954_v56 }
  0xce   : > { %vm216_vm5 = vcmp.eq.s32.totalorder %v3454_v18, %v3539_v27  ;;  %v935_v48 = vand.u32 4294901760, %v934_v60 }
  0xcf   : > { %3015 = vset.pattern.permute.xlu1 %v3085_v5  ;;  %v956_v59 = vand.u32 4294901760, %v955_v58 }
  0xd0   : > { %337 = vperm.xlu1 %3015, %v290_v35   ;;  %v2080_v35 = vsel %vm343_vm11, 1.0, %v3088_v24 }
  0xd1   : > { %v3552_v63 = vpop.permute.xlu0 %581  ;;  %v391_v49 = vadd.f32 %v2080_v35, %v2064_v42  ;;  %v3629_v35 = vsub.f32 %v3295_v53, %v4239_v37  ;;  %v2111_v42 = vsel %vm598_vm14, 1.0, %v3088_v24 }
  0xd2   : > { %v3559_v5 = vpop.permute.xlu1 %307 }
  0xd3   : > { %vm344_vm6 = vcmp.eq.s32.totalorder %v3454_v18, %v3559_v5  ;;  %v961_v37 = vand.u32 4294901760, %v3629_v35 }
  0xd4   : > { %3017 = vset.pattern.permute.xlu1 %v3086_v8  ;;  %v2081_v61 = vsel %vm344_vm6, 1.0, %v3088_v24  ;;  %vm603_vm6 = vcmp.eq.s32.totalorder %v3454_v18, %v3511_v16 }
  0xd5   : > { %462 = vperm.xlu1 %3017, %v417_v9   ;;  %v3585_v8 = vpop.permute.xlu0 %584  ;;  %v947_v9 = vand.u32 4294901760, %v3594_v38  ;;  %v3702_v51 = vsub.f32 %v3629_v35, %v961_v37 }
  0xd6   : > { %4236 = vst [vmem:[#allocation15_spill] sm:$0xff] %v3585_v8 }
  0xd7   : > { %v433_v45 = vpop.permute.xlu1 %432 }
  0xd8   : > { %vm471_vm2 = vcmp.eq.s32.totalorder %v3454_v18, %v433_v45  ;;  %v2112_v45 = vsel %vm599_vm0, 1.0, %v3088_v24 }
  0xd9   : > { %v2096_v25 = vsel %vm471_vm2, 1.0, %v3088_v24  ;;  %3018 = vset.pattern.permute.xlu1 %v4237_v11  ;;  %v3621_v47 = vpop.permute.xlu0 %587  ;;  %v4240_v11 = vand.u32 4294901760, %v3300_v54 }
  0xda   : > { %4238 = vst [vmem:[#allocation16_spill] sm:$0xff] %v3621_v47  ;;  %v519_v55 = vadd.f32 %v2096_v25, %v391_v49  ;;  %590 = vperm.xlu1 %3018, %v545_v26   ;;  %v390_v26 = vadd.f32 %v2079_v41, %v2063_v1  ;;  %v3643_v49 = vsel %vm600_vm1, 1.0, %v3088_v24  ;;  %v941_v25 = vsub.f32 %v3576_v2, %v940_v50 }
  0xdb   : > { %v3654_v23 = vsub.f32 %v3300_v54, %v4240_v11  ;;  %v948_v1 = vsub.f32 %v3594_v38, %v947_v9  ;;  %v3675_v11 = vsel %vm602_vm4, 1.0, %v3088_v24 }
  0xdc   : > { %v3647_v53 = vpop.permute.xlu1 %182  ;;  %v647_v41 = vadd.f32 %v2112_v45, %v519_v55  ;;  %v4242_v55 = vand.u32 4294901760, %v3327_v62  ;;  %v942_v20 = vand.u32 4294901760, %v941_v25 }
  0xdd   : > { %v968_v12 = vand.u32 4294901760, %v3654_v23  ;;  %v949_v25 = vand.u32 4294901760, %v948_v1  ;;  %vm217_vm13 = vcmp.eq.s32.totalorder %v3454_v18, %v3647_v53 }
  0xde   : > { %593 = vperm.xlu1 %3018, %v546_v32   ;;  %v424_v54 = vpop.permute.xlu0 %423  ;;  %v3686_v32 = vsub.f32 %v3327_v62, %v4242_v55  ;;  %v3699_v55 = vand.u32 4294901760, %v647_v41  ;;  %v3711_v62 = vpack.c.bf16 %v942_v20, %v935_v48  ;;  %v963_v20 = vand.u32 4294901760, %v3702_v51 }
  0xdf   : > { %vm468_vm7 = vcmp.eq.s32.totalorder %v3454_v18, %v424_v54  ;;  %v2065_v54 = vsel %vm216_vm5, 1.0, %v3088_v24  ;;  %v3714_v1 = vsub.f32 %v3654_v23, %v968_v12  ;;  %v3723_v47 = vpack.c.bf16 %v956_v59, %v949_v25 }
  0xe0   : > { %v2093_v45 = vsel %vm468_vm7, 1.0, %v3088_v24  ;;  %v982_v5 = vand.u32 4294901760, %v3686_v32  ;;  %v392_v58 = vadd.f32 %v2081_v61, %v2065_v54  ;;  %v4243_v54 = vand.u32 4294901760, %v3345_v4 }
  0xe1   : > { %v516_v40 = vadd.f32 %v2093_v45, %v388_v17  ;;  %v311_v3 = vpop.permute.xlu1 %310  ;;  %v3709_v45 = vpack.c.bf16 %v940_v50, %v933_v46  ;;  %v3725_v46 = vpack.c.bf16 %v968_v12, %v961_v37  ;;  %v4244_v61 = vand.u32 4294901760, %v3350_v6 }
  0xe2   : > { %v430_v60 = vpop.permute.xlu0 %429  ;;  %v3740_v59 = vsub.f32 %v3686_v32, %v982_v5  ;;  %vm345_vm11 = vcmp.eq.s32.totalorder %v3454_v18, %v311_v3  ;;  %v4249_v51 = vand.u32 4294901760, %v3396_v13  ;;  %vm604_vm5 = vcmp.eq.s32.totalorder %v3454_v18, %v3528_v7 }
  0xe3   : > { %v644_v27 = vadd.f32 %v3579_v52, %v516_v40  ;;  %vm470_vm8 = vcmp.eq.s32.totalorder %v3454_v18, %v430_v60  ;;  %v3718_v52 = vpack.c.bf16 %v954_v56, %v947_v9  ;;  %v3721_v40 = vsub.f32 %v647_v41, %v3699_v55 }
  0xe4   : > { %v2095_v17 = vsel %vm470_vm8, 1.0, %v3088_v24  ;;  %v970_v56 = vand.u32 4294901760, %v3714_v1  ;;  %v3737_v41 = vsub.f32 %v3681_v29, %v975_v43  ;;  %v3756_v25 = vsub.f32 %v3350_v6, %v4244_v61 }
  0xe5   : > { %v3716_v57 = vand.u32 4294901760, %v644_v27  ;;  %v518_v44 = vadd.f32 %v2095_v17, %v390_v26  ;;  %v3732_v26 = vpack.c.bf16 %v982_v5, %v975_v43  ;;  %v3751_v43 = vsub.f32 %v3345_v4, %v4243_v54 }
  0xe6   : > { %v186_v60 = vpop.permute.xlu1 %185  ;;  %v436_v8 = vpop.permute.xlu0 %435  ;;  %v4245_v6 = vand.u32 4294901760, %v3582_v34  ;;  %v2082_v53 = vsel %vm345_vm11, 1.0, %v3088_v24 }
  0xe7   : > { %v3729_v50 = vsub.f32 %v644_v27, %v3716_v57  ;;  %v646_v48 = vadd.f32 %v2111_v42, %v518_v44  ;;  %vm472_vm9 = vcmp.eq.s32.totalorder %v3454_v18, %v436_v8  ;;  %vm218_vm10 = vcmp.eq.s32.totalorder %v3454_v18, %v186_v60 }
  0xe8   : > { %v2097_v9 = vsel %vm472_vm9, 1.0, %v3088_v24  ;;  %v798_v42 = vand.u32 4294901760, %v3721_v40  ;;  %v2067_v4 = vsel %vm218_vm10, 1.0, %v3088_v24 }
  0xe9   : > { %v3742_v12 = vand.u32 4294901760, %v646_v48  ;;  %v520_v37 = vadd.f32 %v2097_v9, %v392_v58  ;;  %v768_v44 = vand.u32 4294901760, %v3729_v50 }
  0xea   : > { %v442_v8 = vpop.permute.xlu0 %441 }
  0xeb   : > { %v3759_v27 = vsub.f32 %v646_v48, %v3742_v12  ;;  %v648_v5 = vadd.f32 %v3643_v49, %v520_v37  ;;  %v314_v17 = vpop.permute.xlu1 %313  ;;  %2523 = vmatmul.mubr.f32.vlgmr.msra.gmra.mrb[0].mxu0 %v768_v44  ;;  %vm474_vm12 = vcmp.eq.s32.totalorder %v3454_v18, %v442_v8  ;;  %v769_v1 = vsub.f32 %v3729_v50, %v768_v44 }
  0xec   : > { %vm346_vm14 = vcmp.eq.s32.totalorder %v3454_v18, %v314_v17  ;;  %2525 = vmatprep.mubr.f32.mxu0 %v4245_v6  ;;  %v2099_v58 = vsel %vm474_vm12, 1.0, %v3088_v24  ;;  %2789 = vmatpush3.bf16.msra.mxu0 %v3532_v31  ;;  %v799_v44 = vsub.f32 %v3721_v40, %v798_v42  ;;  %v3783_v8 = vpack.c.bf16 %v3523_v30, %v3518_v10 }
  0xed   : > { %v3772_v49 = vand.u32 4294901760, %v648_v5  ;;  %v2083_v60 = vsel %vm346_vm14, 1.0, %v3088_v24  ;;  %v770_v48 = vand.u32 4294901760, %v769_v1  ;;  %v788_v9 = vand.u32 4294901760, %v3759_v27  ;;  %2791 = vmatprep.subr.bf16.mxu0 %v3709_v45 }
  0xee   : > { %v394_v37 = vadd.f32 %v2083_v60, %v2067_v4  ;;  %v2066_v31 = vsel %vm217_vm13, 1.0, %v3088_v24  ;;  %v989_v17 = vand.u32 4294901760, %v3751_v43  ;;  %v4246_v4 = vand.u32 4294901760, %v3669_v33 }
  0xef   : > { %v3787_v54 = vsub.f32 %v648_v5, %v3772_v49  ;;  %2355 = vmatmul.mubr.f32.vlgmr.msra.gmra.mrb[0].mxu1 %v770_v48  ;;  %2526 = vmatmul.mubr.f32.gmra.mrb[2].mxu0 %v788_v9  ;;  %v789_v61 = vsub.f32 %v3759_v27, %v788_v9  ;;  %v996_v10 = vand.u32 4294901760, %v3756_v25  ;;  %v4247_v30 = vand.u32 4294901760, %v3372_v14 }
  0xf0   : > { %v522_v3 = vadd.f32 %v2099_v58, %v394_v37  ;;  %v439_v1 = vpop.permute.xlu1 %438  ;;  %2357 = vmatprep.mubr.f32.mxu1 %v4246_v4  ;;  %2528 = vmatprep.mubr.f32.mxu0 %v798_v42  ;;  %v4248_v5 = vand.u32 4294901760, %v3377_v15  ;;  %v393_v48 = vadd.f32 %v2082_v53, %v2066_v31  ;;  %v800_v9 = vand.u32 4294901760, %v799_v44 }
  0xf1   : > { %v3797_v6 = vsub.f32 %v3372_v14, %v4247_v30  ;;  %vm473_vm15 = vcmp.eq.s32.totalorder %v3454_v18, %v439_v1  ;;  %v790_v58 = vand.u32 4294901760, %v789_v61  ;;  %v808_v33 = vand.u32 4294901760, %v3787_v54  ;;  %2693 = vmatpush3.bf16.msra.mxu1 %v3546_v0  ;;  %2793 = vmatpush3.bf16.msra.mxu0 %v3709_v45 }
  0xf2   : > { %v3802_v60 = vsub.f32 %v3377_v15, %v4248_v5  ;;  %v650_v42 = vadd.f32 %v3675_v11, %v522_v3  ;;  %v2098_v14 = vsel %vm473_vm15, 1.0, %v3088_v24  ;;  %2695 = vmatprep.subr.bf16.mxu1 %v3711_v62  ;;  %2795 = vmatprep.subr.bf16.mxu0 %v3718_v52  ;;  %v3814_v15 = vpack.c.bf16 %v3576_v2, %v3571_v28 }
  0xf3   : > { %v521_v53 = vadd.f32 %v2098_v14, %v393_v48  ;;  %2358 = vmatmul.mubr.f32.gmra.mrb[2].mxu1 %v790_v58  ;;  %2529 = vmatmul.mubr.f32.gmra.mrb[4].mxu0 %v808_v33  ;;  %v809_v0 = vsub.f32 %v3787_v54, %v808_v33  ;;  %v2702_v45 = vpack.c.bf16 %v970_v56, %v963_v20  ;;  %v977_v11 = vand.u32 4294901760, %v3737_v41 }
  0xf4   : > { %v3820_v37 = vand.u32 4294901760, %v650_v42  ;;  %2360 = vmatprep.mubr.f32.mxu1 %v800_v9  ;;  %v984_v44 = vand.u32 4294901760, %v3740_v59  ;;  %v990_v28 = vsub.f32 %v3751_v43, %v989_v17  ;;  %v997_v2 = vsub.f32 %v3756_v25, %v996_v10 }
  0xf5   : > { %v649_v31 = vadd.f32 %v3660_v19, %v521_v53  ;;  %v3828_v61 = vpop.permute.xlu1 %188  ;;  %v810_v3 = vand.u32 4294901760, %v809_v0  ;;  %2697 = vmatpush3.bf16.msra.mxu1 %v3711_v62  ;;  %2797 = vmatpush3.bf16.msra.mxu0 %v3718_v52  ;;  %v3835_v20 = vsub.f32 %v3396_v13, %v4249_v51  ;;  %v4250_v56 = vand.u32 4294901760, %v3401_v22 }
  0xf6   : > { %v3843_v59 = vsub.f32 %v650_v42, %v3820_v37  ;;  %2699 = vmatprep.subr.bf16.mxu1 %v3723_v47  ;;  %2799 = vmatprep.subr.bf16.mxu0 %v3725_v46  ;;  %v1003_v19 = vand.u32 4294901760, %v3797_v6  ;;  %v1010_v62 = vand.u32 4294901760, %v3802_v60  ;;  %v3851_v13 = vpack.c.bf16 %v3599_v39, %v3594_v38 }
  0xf7   : > { %v3840_v41 = vsub.f32 %v3401_v22, %v4250_v56  ;;  %v3853_v52 = vand.u32 4294901760, %v649_v31  ;;  %2361 = vmatmul.mubr.f32.gmra.mrb[4].mxu1 %v810_v3  ;;  %v2706_v1 = vpack.c.bf16 %v984_v44, %v977_v11  ;;  %v991_v30 = vand.u32 4294901760, %v990_v28 }
  0xf8   : > { %v828_v22 = vand.u32 4294901760, %v3843_v59  ;;  %v1017_v5 = vand.u32 4294901760, %v3835_v20  ;;  %v998_v39 = vand.u32 4294901760, %v997_v2  ;;  %v1004_v58 = vsub.f32 %v3797_v6, %v1003_v19 }
  0xf9   : > { %v3857_v4 = vsub.f32 %v649_v31, %v3853_v52  ;;  %2701 = vmatpush3.bf16.msra.mxu1 %v3723_v47  ;;  %2801 = vmatpush3.bf16.msra.mxu0 %v3725_v46  ;;  %v1024_v48 = vand.u32 4294901760, %v3840_v41  ;;  %v1011_v33 = vsub.f32 %v3802_v60, %v1010_v62  ;;  %v3868_v42 = vpack.c.bf16 %v3654_v23, %v3629_v35 }
  0xfa   : > { %v317_v38 = vpop.permute.xlu1 %316  ;;  %2703 = vmatprep.subr.bf16.mxu1 %v2702_v45  ;;  %2803 = vmatprep.subr.bf16.mxu0 %v3732_v26  ;;  %v829_v46 = vsub.f32 %v3843_v59, %v828_v22  ;;  %v2806_v14 = vpack.c.bf16 %v996_v10, %v989_v17  ;;  %v1018_v53 = vsub.f32 %v3835_v20, %v1017_v5  ;;  %v1005_v35 = vand.u32 4294901760, %v1004_v58  ;;  %v448_v17 = vpop.permute.xlu0 %447 }
  0xfb   : > { %v818_v47 = vand.u32 4294901760, %v3857_v4  ;;  %v1025_v0 = vsub.f32 %v3840_v41, %v1024_v48  ;;  %v2710_v11 = vpack.c.bf16 %v998_v39, %v991_v30  ;;  %v1012_v23 = vand.u32 4294901760, %v1011_v33 }
  0xfc   : > { %v3879_v44 = vpack.c.bf16 %v3686_v32, %v3681_v29  ;;  %v830_v10 = vand.u32 4294901760, %v829_v46  ;;  %v1019_v31 = vand.u32 4294901760, %v1018_v53  ;;  %vm476_vm0 = vcmp.eq.s32.totalorder %v3454_v18, %v448_v17 }
  0xfd   : > { %2531 = vmatprep.mubr.f32.mxu0 %v818_v47  ;;  %v819_v9 = vsub.f32 %v3857_v4, %v818_v47  ;;  %2705 = vmatpush3.bf16.msra.mxu1 %v2702_v45  ;;  %v2810_v45 = vpack.c.bf16 %v1010_v62, %v1003_v19  ;;  %v1026_v3 = vand.u32 4294901760, %v1025_v0  ;;  %v2714_v51 = vpack.c.bf16 %v1012_v23, %v1005_v35 }
  0xfe   : > { %2532 = vmatmul.mubr.f32.gmra.mrb[6].mxu0 %v828_v22  ;;  %2707 = vmatprep.subr.bf16.mxu1 %v2706_v1  ;;  %v3885_v29 = vpack.c.bf16 %v3756_v25, %v3751_v43  ;;  %vm347_vm2 = vcmp.eq.s32.totalorder %v3454_v18, %v317_v38  ;;  %v2101_v56 = vsel %vm476_vm0, 1.0, %v3088_v24  ;;  %vm219_vm4 = vcmp.eq.s32.totalorder %v3454_v18, %v3828_v61 }
  0xff   : > { %v192_v28 = vpop.permute.xlu1 %191  ;;  %v820_v2 = vand.u32 4294901760, %v819_v9  ;;  %2805 = vmatpush3.bf16.msra.mxu0 %v3732_v26  ;;  %v2814_v26 = vpack.c.bf16 %v1024_v48, %v1017_v5  ;;  %v2718_v19 = vpack.c.bf16 %v1026_v3, %v1019_v31  ;;  %v3897_v62 = vpack.c.bf16 %v3802_v60, %v3797_v6 }
 0x100   : > { %2807 = vmatprep.subr.bf16.mxu0 %v2806_v14  ;;  %vm220_vm1 = vcmp.eq.s32.totalorder %v3454_v18, %v192_v28  ;;  %v2084_v22 = vsel %vm347_vm2, 1.0, %v3088_v24  ;;  %v2068_v61 = vsel %vm219_vm4, 1.0, %v3088_v24  ;;  %v2117_v48 = vsel %vm604_vm5, 1.0, %v3088_v24 }
 0x101   : > { %2363 = vmatprep.mubr.f32.mxu1 %v820_v2  ;;  %2709 = vmatpush3.bf16.msra.mxu1 %v2706_v1  ;;  %v2069_v43 = vsel %vm220_vm1, 1.0, %v3088_v24  ;;  %v395_v6 = vadd.f32 %v2084_v22, %v2068_v61  ;;  %v3909_v7 = vpack.c.bf16 %v3840_v41, %v3835_v20  ;;  %v2116_v39 = vsel %vm603_vm6, 1.0, %v3088_v24  ;;  %v454_v2 = vpop.permute.xlu0 %453 }
 0x102   : > { %2364 = vmatmul.mubr.f32.gmra.mrb[6].mxu1 %v830_v10  ;;  %2711 = vmatprep.subr.bf16.mxu1 %v2710_v11  ;;  %vm478_vm9 = vcmp.eq.s32.totalorder %v3454_v18, %v454_v2  ;;  %vm606_vm13 = vcmp.eq.s32.totalorder %v3454_v18, %v3552_v63  ;;  %vm605_vm14 = vcmp.eq.s32.totalorder %v3454_v18, %v3541_v21 }
 0x103   : > { %2809 = vmatpush3.bf16.msra.mxu0 %v2806_v14  ;;  %v2103_v31 = vsel %vm478_vm9, 1.0, %v3088_v24  ;;  %v2118_v63 = vsel %vm605_vm14, 1.0, %v3088_v24 }
 0x104   : > { %v320_v32 = vpop.permute.xlu1 %319  ;;  %2811 = vmatprep.subr.bf16.mxu0 %v2810_v45 }
 0x105   : > { %vm348_vm3 = vcmp.eq.s32.totalorder %v3454_v18, %v320_v32  ;;  %2713 = vmatpush3.bf16.msra.mxu1 %v2710_v11 }
 0x106   : > { %v2085_v25 = vsel %vm348_vm3, 1.0, %v3088_v24  ;;  %2715 = vmatprep.subr.bf16.mxu1 %v2714_v51 }
 0x107   : > { %v396_v1 = vadd.f32 %v2085_v25, %v2069_v43  ;;  %2813 = vmatpush3.bf16.msra.mxu0 %v2810_v45 }
 0x108   : > { %2815 = vmatprep.subr.bf16.mxu0 %v2814_v26 }
 0x109   : > { %v524_v30 = vadd.f32 %v2101_v56, %v396_v1  ;;  %v445_v5 = vpop.permute.xlu1 %444  ;;  %2717 = vmatpush3.bf16.msra.mxu1 %v2714_v51 }
 0x10a   : > { %vm475_vm7 = vcmp.eq.s32.totalorder %v3454_v18, %v445_v5  ;;  %2719 = vmatprep.subr.bf16.mxu1 %v2718_v19 }
 0x10b   : > { %v652_v60 = vadd.f32 %v2117_v48, %v524_v30  ;;  %v2100_v38 = vsel %vm475_vm7, 1.0, %v3088_v24  ;;  %2817 = vmatpush3.bf16.msra.mxu0 %v2814_v26 }
 0x10c   : > { %v523_v16 = vadd.f32 %v2100_v38, %v395_v6  ;;  %2819 = vmatprep.subr.bf16.mxu0 %v3233_v36 }
 0x10d   : > { %v3914_v58 = vand.u32 4294901760, %v652_v60  ;;  %2721 = vmatpush3.bf16.msra.mxu1 %v2718_v19  ;;  %v2119_v19 = vsel %vm606_vm13, 1.0, %v3088_v24 }
 0x10e   : > { %v651_v33 = vadd.f32 %v2116_v39, %v523_v16  ;;  %v195_v47 = vpop.permute.xlu1 %194  ;;  %2723 = vmatprep.subr.bf16.mxu1 %v3783_v8 }
 0x10f   : > { %v3918_v46 = vsub.f32 %v652_v60, %v3914_v58  ;;  %vm221_vm12 = vcmp.eq.s32.totalorder %v3454_v18, %v195_v47 }
 0x110   : > { %v3920_v20 = vand.u32 4294901760, %v651_v33  ;;  %v2070_v32 = vsel %vm221_vm12, 1.0, %v3088_v24 }
 0x111   : > { %v848_v41 = vand.u32 4294901760, %v3918_v46 }
 0x112   : > { %v3924_v14 = vsub.f32 %v651_v33, %v3920_v20 }
 0x113   : > { %v323_v9 = vpop.permute.xlu1 %322  ;;  %v849_v0 = vsub.f32 %v3918_v46, %v848_v41 }
 0x114   : > { %v838_v53 = vand.u32 4294901760, %v3924_v14  ;;  %vm349_vm10 = vcmp.eq.s32.totalorder %v3454_v18, %v323_v9 }
 0x115   : > { %v850_v28 = vand.u32 4294901760, %v849_v0  ;;  %v2086_v3 = vsel %vm349_vm10, 1.0, %v3088_v24 }
 0x116   : > { %2534 = vmatprep.mubr.f32.mxu0 %v838_v53  ;;  %v839_v11 = vsub.f32 %v3924_v14, %v838_v53  ;;  %v397_v43 = vadd.f32 %v2086_v3, %v2070_v32  ;;  %v460_v53 = vpop.permute.xlu0 %459  ;;  %v4252_v3 = vld [vmem:[#allocation15_spill] sm:$0xff] }
 0x117   : > { %2535 = vmatmul.mubr.f32.gmra.mrb[8].mxu0 %v848_v41  ;;  %vm480_vm1 = vcmp.eq.s32.totalorder %v3454_v18, %v460_v53  ;;  %vm607_vm6 = vcmp.eq.s32.totalorder %v3454_v18, %v4252_v3 }
 0x118   : > { %v198_v35 = vpop.permute.xlu1 %197  ;;  %v840_v23 = vand.u32 4294901760, %v839_v11 }
 0x119   : > { %vm222_vm8 = vcmp.eq.s32.totalorder %v3454_v18, %v198_v35 }
 0x11a   : > { %2366 = vmatprep.mubr.f32.mxu1 %v840_v23  ;;  %v2071_v10 = vsel %vm222_vm8, 1.0, %v3088_v24  ;;  %v2105_v23 = vsel %vm480_vm1, 1.0, %v3088_v24 }
 0x11b   : > { %2367 = vmatmul.mubr.f32.gmra.mrb[8].mxu1 %v850_v28  ;;  %v4251_v28 = vld [vmem:[#allocation16_spill] sm:$0xff] }
 0x11c   : > { %vm608_vm5 = vcmp.eq.s32.totalorder %v3454_v18, %v4251_v28 }
 0x11d   : > { %v326_v17 = vpop.permute.xlu1 %325 }
 0x11e   : > { %vm350_vm11 = vcmp.eq.s32.totalorder %v3454_v18, %v326_v17 }
 0x11f   : > { %v2087_v45 = vsel %vm350_vm11, 1.0, %v3088_v24 }
 0x120   : > { %v398_v51 = vadd.f32 %v2087_v45, %v2071_v10 }
 0x122   : > { %v526_v26 = vadd.f32 %v2103_v31, %v398_v51  ;;  %v451_v56 = vpop.permute.xlu1 %450  ;;  %v2121_v51 = vsel %vm608_vm5, 1.0, %v3088_v24 }
 0x123   : > { %vm477_vm15 = vcmp.eq.s32.totalorder %v3454_v18, %v451_v56 }
 0x124   : > { %v654_v25 = vadd.f32 %v2119_v19, %v526_v26  ;;  %v2102_v22 = vsel %vm477_vm15, 1.0, %v3088_v24 }
 0x125   : > { %v525_v1 = vadd.f32 %v2102_v22, %v397_v43  ;;  %v2120_v43 = vsel %vm607_vm6, 1.0, %v3088_v24 }
 0x126   : > { %v3947_v61 = vand.u32 4294901760, %v654_v25 }
 0x127   : > { %v653_v30 = vadd.f32 %v2118_v63, %v525_v1  ;;  %v201_v5 = vpop.permute.xlu1 %200 }
 0x128   : > { %v3950_v48 = vsub.f32 %v654_v25, %v3947_v61  ;;  %vm223_vm4 = vcmp.eq.s32.totalorder %v3454_v18, %v201_v5 }
 0x129   : > { %v3952_v6 = vand.u32 4294901760, %v653_v30  ;;  %v2072_v10 = vsel %vm223_vm4, 1.0, %v3088_v24 }
 0x12a   : > { %v868_v21 = vand.u32 4294901760, %v3950_v48 }
 0x12b   : > { %v3956_v60 = vsub.f32 %v653_v30, %v3952_v6 }
 0x12c   : > { %v329_v38 = vpop.permute.xlu1 %328  ;;  %v869_v39 = vsub.f32 %v3950_v48, %v868_v21 }
 0x12d   : > { %v858_v16 = vand.u32 4294901760, %v3956_v60  ;;  %vm351_vm2 = vcmp.eq.s32.totalorder %v3454_v18, %v329_v38 }
 0x12e   : > { %v870_v9 = vand.u32 4294901760, %v869_v39  ;;  %v2088_v2 = vsel %vm351_vm2, 1.0, %v3088_v24 }
 0x12f   : > { %2537 = vmatprep.mubr.f32.mxu0 %v858_v16  ;;  %v859_v33 = vsub.f32 %v3956_v60, %v858_v16  ;;  %v399_v32 = vadd.f32 %v2088_v2, %v2072_v10 }
 0x130   : > { %2538 = vmatmul.mubr.f32.gmra.mrb[10].mxu0 %v868_v21 }
 0x131   : > { %v204_v47 = vpop.permute.xlu1 %203  ;;  %v860_v41 = vand.u32 4294901760, %v859_v33 }
 0x132   : > { %vm224_vm0 = vcmp.eq.s32.totalorder %v3454_v18, %v204_v47 }
 0x133   : > { %2369 = vmatprep.mubr.f32.mxu1 %v860_v41  ;;  %v2073_v11 = vsel %vm224_vm0, 1.0, %v3088_v24 }
 0x134   : > { %2370 = vmatmul.mubr.f32.gmra.mrb[10].mxu1 %v870_v9 }
 0x136   : > { %v332_v0 = vpop.permute.xlu1 %331 }
 0x137   : > { %vm352_vm3 = vcmp.eq.s32.totalorder %v3454_v18, %v332_v0 }
 0x138   : > { %v2089_v35 = vsel %vm352_vm3, 1.0, %v3088_v24 }
 0x139   : > { %v400_v17 = vadd.f32 %v2089_v35, %v2073_v11  ;;  %v466_v35 = vpop.permute.xlu0 %465 }
 0x13a   : > { %vm482_vm13 = vcmp.eq.s32.totalorder %v3454_v18, %v466_v35 }
 0x13b   : > { %v528_v45 = vadd.f32 %v2105_v23, %v400_v17  ;;  %v457_v31 = vpop.permute.xlu1 %456 }
 0x13c   : > { %vm479_vm7 = vcmp.eq.s32.totalorder %v3454_v18, %v457_v31 }
 0x13d   : > { %v656_v26 = vadd.f32 %v2121_v51, %v528_v45  ;;  %v2104_v56 = vsel %vm479_vm7, 1.0, %v3088_v24 }
 0x13e   : > { %v527_v19 = vadd.f32 %v2104_v56, %v399_v32 }
 0x13f   : > { %v3979_v25 = vand.u32 4294901760, %v656_v26 }
 0x140   : > { %v655_v22 = vadd.f32 %v2120_v43, %v527_v19  ;;  %v207_v1 = vpop.permute.xlu1 %206 }
 0x141   : > { %v3982_v63 = vsub.f32 %v656_v26, %v3979_v25  ;;  %vm225_vm9 = vcmp.eq.s32.totalorder %v3454_v18, %v207_v1  ;;  %v2107_v26 = vsel %vm482_vm13, 1.0, %v3088_v24 }
 0x142   : > { %v3984_v30 = vand.u32 4294901760, %v655_v22  ;;  %v2074_v23 = vsel %vm225_vm9, 1.0, %v3088_v24 }
 0x143   : > { %v888_v5 = vand.u32 4294901760, %v3982_v63 }
 0x144   : > { %v3988_v21 = vsub.f32 %v655_v22, %v3984_v30 }
 0x145   : > { %v335_v38 = vpop.permute.xlu1 %334  ;;  %v889_v39 = vsub.f32 %v3982_v63, %v888_v5 }
 0x146   : > { %v878_v16 = vand.u32 4294901760, %v3988_v21  ;;  %vm353_vm8 = vcmp.eq.s32.totalorder %v3454_v18, %v335_v38 }
 0x147   : > { %v890_v9 = vand.u32 4294901760, %v889_v39  ;;  %v2090_v11 = vsel %vm353_vm8, 1.0, %v3088_v24 }
 0x148   : > { %2540 = vmatprep.mubr.f32.mxu0 %v878_v16  ;;  %v879_v33 = vsub.f32 %v3988_v21, %v878_v16  ;;  %v401_v17 = vadd.f32 %v2090_v11, %v2074_v23  ;;  %v4256_v11 = vld [vmem:[#allocation6_spill] sm:$0xff] }
 0x149   : > { %2541 = vmatmul.mubr.f32.gmra.mrb[12].mxu0 %v888_v5 }
 0x14a   : > { %v210_v47 = vpop.permute.xlu1 %209  ;;  %v880_v41 = vand.u32 4294901760, %v879_v33 }
 0x14b   : > { %vm226_vm12 = vcmp.eq.s32.totalorder %v3454_v18, %v210_v47 }
 0x14c   : > { %2372 = vmatprep.mubr.f32.mxu1 %v880_v41  ;;  %v2075_v10 = vsel %vm226_vm12, 1.0, %v3088_v24 }
 0x14d   : > { %2373 = vmatmul.mubr.f32.gmra.mrb[12].mxu1 %v890_v9 }
 0x14f   : > { %v338_v53 = vpop.permute.xlu1 %337 }
 0x150   : > { %vm354_vm10 = vcmp.eq.s32.totalorder %v3454_v18, %v338_v53  ;;  %v4254_v53 = vld [vmem:[#allocation14_spill] sm:$0xff] }
 0x151   : > { %v2091_v28 = vsel %vm354_vm10, 1.0, %v3088_v24 }
 0x152   : > { %v402_v31 = vadd.f32 %v2091_v28, %v2075_v10 }
 0x154   : > { %v463_v0 = vpop.permute.xlu1 %462  ;;  %v530_v43 = vadd.f32 %v2107_v26, %v402_v31 }
 0x155   : > { %vm481_vm11 = vcmp.eq.s32.totalorder %v3454_v18, %v463_v0  ;;  %v4255_v0 = vld [vmem:[#allocation5_spill] sm:$0xff] }
 0x156   : > { %v2106_v2 = vsel %vm481_vm11, 1.0, %v3088_v24 }
 0x157   : > { %v529_v3 = vadd.f32 %v2106_v2, %v401_v17 }
 0x159   : > { %v591_v45 = vpop.permute.xlu1 %590 }
 0x15a   : > { %vm609_vm14 = vcmp.eq.s32.totalorder %v3454_v18, %v591_v45 }
 0x15b   : > { %v2122_v51 = vsel %vm609_vm14, 1.0, %v3088_v24 }
 0x15c   : > { %v657_v32 = vadd.f32 %v2122_v51, %v529_v3 }
 0x15d   : > { %v594_v56 = vpop.permute.xlu1 %593 }
 0x15e   : > { %v4007_v19 = vand.u32 4294901760, %v657_v32  ;;  %vm610_vm15 = vcmp.eq.s32.totalorder %v3454_v18, %v594_v56 }
 0x15f   : > { %v2123_v22 = vsel %vm610_vm15, 1.0, %v3088_v24  ;;  %v4253_v24 = vld [vmem:[#allocation12_spill] sm:$0xff] }
 0x160   : > { %v4012_v1 = vsub.f32 %v657_v32, %v4007_v19  ;;  %v658_v5 = vadd.f32 %v2123_v22, %v530_v43 }
 0x162   : > { %v4014_v38 = vand.u32 4294901760, %v658_v5  ;;  %v898_v16 = vand.u32 4294901760, %v4012_v1 }
 0x164   : > { %v4018_v39 = vsub.f32 %v658_v5, %v4014_v38  ;;  %2543 = vmatprep.mubr.f32.mxu0 %v898_v16  ;;  %v899_v33 = vsub.f32 %v4012_v1, %v898_v16 }
 0x166   : > { %v900_v47 = vand.u32 4294901760, %v899_v33  ;;  %v908_v41 = vand.u32 4294901760, %v4018_v39 }
 0x168   : > { %2375 = vmatprep.mubr.f32.mxu1 %v900_v47  ;;  %2544 = vmatmul.mubr.f32.gmra.mrb[14].mxu0 %v908_v41  ;;  %v909_v18 = vsub.f32 %v4018_v39, %v908_v41 }
 0x169   : > { %2578 = vmatprep.mubr.f32.mxu0 %v4253_v24 }
 0x16a   : > { %v910_v9 = vand.u32 4294901760, %v909_v18 }
 0x16c   : > { %2376 = vmatmul.mubr.f32.gmra.mrb[14].mxu1 %v910_v9  ;;  %2579 = vmatmul.mubr.f32.vlgmr.msra.gmra.mrb[0].mxu0 %v3716_v57 }
 0x16d   : > { %2410 = vmatprep.mubr.f32.mxu1 %v4253_v24  ;;  %2581 = vmatprep.mubr.f32.mxu0 %v4254_v53 }
 0x16e   : > { %2821 = vmatpush3.bf16.msra.mxu0 %v3233_v36  ;;  %v4257_v36 = vld [vmem:[#allocation7_spill] sm:$0xff] }
 0x16f   : > { %2823 = vmatprep.subr.bf16.mxu0 %v4255_v0 }
 0x170   : > { %2411 = vmatmul.mubr.f32.vlgmr.msra.gmra.mrb[0].mxu1 %v3716_v57  ;;  %2582 = vmatmul.mubr.f32.gmra.mrb[2].mxu0 %v3742_v12 }
 0x171   : > { %2725 = vmatpush3.bf16.msra.mxu1 %v3783_v8  ;;  %2413 = vmatprep.mubr.f32.mxu1 %v4254_v53  ;;  %v4258_v8 = vld [vmem:[#allocation8_spill] sm:$0xff] }
 0x172   : > { %2584 = vmatprep.mubr.f32.mxu0 %v3699_v55  ;;  %2825 = vmatpush3.bf16.msra.mxu0 %v4255_v0 }
 0x173   : > { %2727 = vmatprep.subr.bf16.mxu1 %v3814_v15  ;;  %2827 = vmatprep.subr.bf16.mxu0 %v4256_v11 }
 0x174   : > { %2414 = vmatmul.mubr.f32.gmra.mrb[2].mxu1 %v3742_v12  ;;  %2585 = vmatmul.mubr.f32.gmra.mrb[4].mxu0 %v3772_v49 }
 0x175   : > { %2729 = vmatpush3.bf16.msra.mxu1 %v3814_v15  ;;  %2416 = vmatprep.mubr.f32.mxu1 %v3699_v55  ;;  %v4259_v15 = vld [vmem:[#allocation9_spill] sm:$0xff] }
 0x176   : > { %2587 = vmatprep.mubr.f32.mxu0 %v3853_v52  ;;  %2829 = vmatpush3.bf16.msra.mxu0 %v4256_v11 }
 0x177   : > { %2731 = vmatprep.subr.bf16.mxu1 %v3851_v13  ;;  %2831 = vmatprep.subr.bf16.mxu0 %v4257_v36 }
 0x178   : > { %2417 = vmatmul.mubr.f32.gmra.mrb[4].mxu1 %v3772_v49  ;;  %2588 = vmatmul.mubr.f32.gmra.mrb[6].mxu0 %v3820_v37 }
 0x179   : > { %2733 = vmatpush3.bf16.msra.mxu1 %v3851_v13  ;;  %2419 = vmatprep.mubr.f32.mxu1 %v3853_v52  ;;  %v4260_v13 = vld [vmem:[#allocation10_spill] sm:$0xff] }
 0x17a   : > { %2590 = vmatprep.mubr.f32.mxu0 %v3920_v20  ;;  %2833 = vmatpush3.bf16.msra.mxu0 %v4257_v36 }
 0x17b   : > { %2735 = vmatprep.subr.bf16.mxu1 %v3868_v42  ;;  %2835 = vmatprep.subr.bf16.mxu0 %v4258_v8 }
 0x17c   : > { %2420 = vmatmul.mubr.f32.gmra.mrb[6].mxu1 %v3820_v37  ;;  %2591 = vmatmul.mubr.f32.gmra.mrb[8].mxu0 %v3914_v58 }
 0x17d   : > { %2737 = vmatpush3.bf16.msra.mxu1 %v3868_v42  ;;  %2422 = vmatprep.mubr.f32.mxu1 %v3920_v20  ;;  %v4261_v42 = vld [vmem:[#allocation11_spill] sm:$0xff] }
 0x17e   : > { %2593 = vmatprep.mubr.f32.mxu0 %v3952_v6  ;;  %2837 = vmatpush3.bf16.msra.mxu0 %v4258_v8 }
 0x17f   : > { %2739 = vmatprep.subr.bf16.mxu1 %v3879_v44  ;;  %2839 = vmatprep.subr.bf16.mxu0 %v4259_v15 }
 0x180   : > { %2423 = vmatmul.mubr.f32.gmra.mrb[8].mxu1 %v3914_v58  ;;  %2594 = vmatmul.mubr.f32.gmra.mrb[10].mxu0 %v3947_v61 }
 0x181   : > { %2741 = vmatpush3.bf16.msra.mxu1 %v3879_v44  ;;  %2425 = vmatprep.mubr.f32.mxu1 %v3952_v6  ;;  %v4262_v44 = vld [vmem:[#allocation13_spill] sm:$0xff] }
 0x182   : > { %2596 = vmatprep.mubr.f32.mxu0 %v3984_v30  ;;  %2841 = vmatpush3.bf16.msra.mxu0 %v4259_v15 }
 0x183   : > { %2743 = vmatprep.subr.bf16.mxu1 %v3885_v29  ;;  %2843 = vmatprep.subr.bf16.mxu0 %v4260_v13 }
 0x184   : > { %2426 = vmatmul.mubr.f32.gmra.mrb[10].mxu1 %v3947_v61  ;;  %2597 = vmatmul.mubr.f32.gmra.mrb[12].mxu0 %v3979_v25 }
 0x185   : > { %2745 = vmatpush3.bf16.msra.mxu1 %v3885_v29  ;;  %2428 = vmatprep.mubr.f32.mxu1 %v3984_v30 }
 0x186   : > { %2599 = vmatprep.mubr.f32.mxu0 %v4007_v19  ;;  %2845 = vmatpush3.bf16.msra.mxu0 %v4260_v13 }
 0x187   : > { %2747 = vmatprep.subr.bf16.mxu1 %v3897_v62  ;;  %2847 = vmatprep.subr.bf16.mxu0 %v4261_v42 }
 0x188   : > { %2429 = vmatmul.mubr.f32.gmra.mrb[12].mxu1 %v3979_v25  ;;  %2600 = vmatmul.mubr.f32.gmra.mrb[14].mxu0 %v4014_v38 }
 0x189   : > { %2749 = vmatpush3.bf16.msra.mxu1 %v3897_v62  ;;  %2431 = vmatprep.mubr.f32.mxu1 %v4007_v19 }
 0x18a   : > { %2849 = vmatpush3.bf16.msra.mxu0 %v4261_v42  ;;  %2634 = vmatprep.mubr.f32.mxu0 %v4253_v24 }
 0x18b   : > { %2751 = vmatprep.subr.bf16.mxu1 %v3909_v7 }
 0x18c   : > { %2432 = vmatmul.mubr.f32.gmra.mrb[14].mxu1 %v4014_v38 }
 0x18d   : > { %2753 = vmatpush3.bf16.msra.mxu1 %v3909_v7  ;;  %2635 = vmatmul.mubr.f32.vlgmr.msra.gmra.mrb[0].mxu0 %v3716_v57 }
 0x18e   : > { %2466 = vmatprep.mubr.f32.mxu1 %v4262_v44  ;;  %2637 = vmatprep.mubr.f32.mxu0 %v4254_v53 }
 0x190   : > { %2467 = vmatmul.mubr.f32.vlgmr.msra.gmra.mrb[0].mxu1 %v3729_v50 }
 0x191   : > { %2638 = vmatmul.mubr.f32.gmra.mrb[2].mxu0 %v3742_v12  ;;  %2469 = vmatprep.mubr.f32.mxu1 %v3582_v34 }
 0x192   : > { %2640 = vmatprep.mubr.f32.mxu0 %v3699_v55 }
 0x194   : > { %2470 = vmatmul.mubr.f32.gmra.mrb[2].mxu1 %v3759_v27 }
 0x195   : > { %2641 = vmatmul.mubr.f32.gmra.mrb[4].mxu0 %v3772_v49  ;;  %2472 = vmatprep.mubr.f32.mxu1 %v3721_v40 }
 0x196   : > { %2643 = vmatprep.mubr.f32.mxu0 %v3853_v52 }
 0x198   : > { %2473 = vmatmul.mubr.f32.gmra.mrb[4].mxu1 %v3787_v54 }
 0x199   : > { %2644 = vmatmul.mubr.f32.gmra.mrb[6].mxu0 %v3820_v37  ;;  %2475 = vmatprep.mubr.f32.mxu1 %v3857_v4 }
 0x19a   : > { %2646 = vmatprep.mubr.f32.mxu0 %v3920_v20 }
 0x19c   : > { %2476 = vmatmul.mubr.f32.gmra.mrb[6].mxu1 %v3843_v59 }
 0x19d   : > { %2647 = vmatmul.mubr.f32.gmra.mrb[8].mxu0 %v3914_v58  ;;  %2478 = vmatprep.mubr.f32.mxu1 %v3924_v14 }
 0x19e   : > { %2649 = vmatprep.mubr.f32.mxu0 %v3952_v6 }
 0x1a0   : > { %2479 = vmatmul.mubr.f32.gmra.mrb[8].mxu1 %v3918_v46 }
 0x1a1   : > { %2650 = vmatmul.mubr.f32.gmra.mrb[10].mxu0 %v3947_v61  ;;  %2481 = vmatprep.mubr.f32.mxu1 %v3956_v60 }
 0x1a2   : > { %2652 = vmatprep.mubr.f32.mxu0 %v3984_v30 }
 0x1a4   : > { %2482 = vmatmul.mubr.f32.gmra.mrb[10].mxu1 %v3950_v48 }
 0x1a5   : > { %2653 = vmatmul.mubr.f32.gmra.mrb[12].mxu0 %v3979_v25  ;;  %2484 = vmatprep.mubr.f32.mxu1 %v3988_v21 }
 0x1a6   : > { %2655 = vmatprep.mubr.f32.mxu0 %v4007_v19 }
 0x1a8   : > { %2485 = vmatmul.mubr.f32.gmra.mrb[12].mxu1 %v3982_v63 }
 0x1a9   : > { %2656 = vmatmul.mubr.f32.gmra.mrb[14].mxu0 %v4014_v38  ;;  %2487 = vmatprep.mubr.f32.mxu1 %v4012_v1 }
 0x1ac   : > { %2488 = vmatmul.mubr.f32.gmra.mrb[14].mxu1 %v4018_v39 }
 0x260   : > { %v2636_v57 = vpop.f32.mrb[0].mxu0 }
 0x261   : > { %v1867_v34 = vpop.f32.mrb[1].mxu0 }
 0x263   : > { %v2468_v55 = vpop.f32.mrb[0].mxu1 }
 0x264   : > { %v2850_v40 = vadd.f32 %v2636_v57, %v2468_v55  ;;  %v2639_v50 = vpop.f32.mrb[2].mxu0  ;;  %v1257_v12 = vpop.f32.mrb[1].mxu1 }
 0x265   : > { %v2851_v27 = vadd.f32 %v1867_v34, %v1257_v12  ;;  %v1879_v49 = vpop.f32.mrb[3].mxu0 }
 0x266   : > { %1962 = vst [vmem:[%s4120_s22 + $0x8] sm:$0xff] %v2850_v40 }
 0x267   : > { %1961 = vst [vmem:[%s4120_s22] sm:$0xff] %v2851_v27  ;;  %v2471_v54 = vpop.f32.mrb[2].mxu1 }
 0x268   : > { %v2852_v37 = vadd.f32 %v2639_v50, %v2471_v54  ;;  %v2642_v59 = vpop.f32.mrb[4].mxu0  ;;  %v1271_v52 = vpop.f32.mrb[3].mxu1 }
 0x269   : > { %v2853_v4 = vadd.f32 %v1879_v49, %v1271_v52  ;;  %v1891_v29 = vpop.f32.mrb[5].mxu0 }
 0x26a   : > { %1964 = vst [vmem:[%s4120_s22 + $0x18] sm:$0xff] %v2852_v37 }
 0x26b   : > { %1963 = vst [vmem:[%s4120_s22 + $0x10] sm:$0xff] %v2853_v4  ;;  %v2474_v62 = vpop.f32.mrb[4].mxu1 }
 0x26c   : > { %v2854_v7 = vadd.f32 %v2642_v59, %v2474_v62  ;;  %v2645_v58 = vpop.f32.mrb[6].mxu0  ;;  %v1285_v46 = vpop.f32.mrb[5].mxu1 }
 0x26d   : > { %v2855_v20 = vadd.f32 %v1891_v29, %v1285_v46  ;;  %v1903_v14 = vpop.f32.mrb[7].mxu0 }
 0x26e   : > { %1966 = vst [vmem:[%s4120_s22 + $0x28] sm:$0xff] %v2854_v7 }
 0x26f   : > { %1965 = vst [vmem:[%s4120_s22 + $0x20] sm:$0xff] %v2855_v20  ;;  %v2477_v61 = vpop.f32.mrb[6].mxu1 }
 0x270   : > { %v2856_v48 = vadd.f32 %v2645_v58, %v2477_v61  ;;  %v2648_v6 = vpop.f32.mrb[8].mxu0  ;;  %v1299_v60 = vpop.f32.mrb[7].mxu1 }
 0x271   : > { %v2857_v25 = vadd.f32 %v1903_v14, %v1299_v60  ;;  %v1915_v63 = vpop.f32.mrb[9].mxu0 }
 0x272   : > { %1968 = vst [vmem:[%s4120_s22 + $0x38] sm:$0xff] %v2856_v48 }
 0x273   : > { %1967 = vst [vmem:[%s4120_s22 + $0x30] sm:$0xff] %v2857_v25  ;;  %v2480_v30 = vpop.f32.mrb[8].mxu1 }
 0x274   : > { %v2858_v21 = vadd.f32 %v2648_v6, %v2480_v30  ;;  %v2651_v35 = vpop.f32.mrb[10].mxu0  ;;  %v1313_v23 = vpop.f32.mrb[9].mxu1 }
 0x275   : > { %v2859_v28 = vadd.f32 %v1915_v63, %v1313_v23  ;;  %v1927_v2 = vpop.f32.mrb[11].mxu0 }
 0x276   : > { %1970 = vst [vmem:[%s4120_s22 + $0x48] sm:$0xff] %v2858_v21 }
 0x277   : > { %1969 = vst [vmem:[%s4120_s22 + $0x40] sm:$0xff] %v2859_v28  ;;  %v2483_v17 = vpop.f32.mrb[10].mxu1 }
 0x278   : > { %v2860_v10 = vadd.f32 %v2651_v35, %v2483_v17  ;;  %v2654_v45 = vpop.f32.mrb[12].mxu0  ;;  %v1327_v31 = vpop.f32.mrb[11].mxu1 }
 0x279   : > { %v2861_v3 = vadd.f32 %v1927_v2, %v1327_v31  ;;  %v1939_v51 = vpop.f32.mrb[13].mxu0 }
 0x27a   : > { %1972 = vst [vmem:[%s4120_s22 + $0x58] sm:$0xff] %v2860_v10 }
 0x27b   : > { %1971 = vst [vmem:[%s4120_s22 + $0x50] sm:$0xff] %v2861_v3  ;;  %v2486_v32 = vpop.f32.mrb[12].mxu1 }
 0x27c   : > { %v2862_v26 = vadd.f32 %v2654_v45, %v2486_v32  ;;  %v2657_v56 = vpop.f32.mrb[14].mxu0  ;;  %v1341_v19 = vpop.f32.mrb[13].mxu1 }
 0x27d   : > { %v2863_v43 = vadd.f32 %v1939_v51, %v1341_v19  ;;  %v1951_v22 = vpop.f32.mrb[15].mxu0 }
 0x27e   : > { %1974 = vst [vmem:[%s4120_s22 + $0x68] sm:$0xff] %v2862_v26 }
 0x27f   : > { %1973 = vst [vmem:[%s4120_s22 + $0x60] sm:$0xff] %v2863_v43  ;;  %v2489_v1 = vpop.f32.mrb[14].mxu1 }
 0x280   : > { %v2864_v5 = vadd.f32 %v2657_v56, %v2489_v1  ;;  %v1355_v38 = vpop.f32.mrb[15].mxu1 }
 0x281   : > { %v2865_v16 = vadd.f32 %v1951_v22, %v1355_v38 }
 0x282   : > { %1976 = vst [vmem:[%s4120_s22 + $0x78] sm:$0xff] %v2864_v5 }
 0x283   : > { %1975 = vst [vmem:[%s4120_s22 + $0x70] sm:$0xff] %v2865_v16 }
 0x284   : > { %3033 = shalt.err (!%p3030_p3)
}
 0x285   : > { %s3034_s5 = scalar_lea.hbm %s4141_s28, 2048  ;;  %s3038_s8 = scalar_lea.hbm %s4192_s2, 8192 }
 0x286   : > { %p3035_p4 = scmp.ne.s32.totalorder %s4141_s28, %s3034_s5  ;;  %p3039_p9 = scmp.lt.u32.totalorder %s4141_s28, %s4192_s2 }
 0x287   : > { %p3040_p10 = scmp.lt.u32.totalorder %s3038_s8, %s3034_s5  ;;  %p3042_p12 = scmp.lt.u32.totalorder %s3034_s5, %s4141_s28 }
 0x288   : > { %p3036_p7 = pnand %p3035_p4, %p3145_p5 }
 0x289   : > { %p3041_p11 = por %p3040_p10, %p3039_p9 }
 0x28a   : > { %p3037_p8 = pneg %p3036_p7 }
 0x28b   : > { %p3043_p13 = por %p3042_p12, %p3041_p11 }
 0x28d   : > { %p3044_p0 = pnand %p3043_p13, %p3037_p8 }
 0x28f   : > { %3047 = shalt.err (!%p3044_p0)
}
 0x290   : > { %s3090_s17 = smov 128   ;;  %s3091_s25 = smov 8  }
 0x291   : > { %2930 = dma.vmem_to_hbm [thread:$0]  (%p3145_p5), %s4143_s24, 2048, %s4141_s28, %s4149_s13, %s3090_s17, %s3090_s17, %s3091_s25  }
 0x292 PF: > { %p2936_p1 = scmp.ge.s32.totalorder %s3082_s12, 2  ;;  %s2006_s21 = sand.u32 1, %s3070_s9  }
 0x293   : > { %s2007_s22 = scalar_lea.sflag [#allocation3], %s2006_s21 }
 0x294   : > { %p2933_p2 = pnand %p2936_p1, %p3149_p6 }
 0x296   : > { %3065 = dma.done.wait (!%p2933_p2), %s2007_s22, 2048  }
 0x297   : > { %3067 = vsyncadd (!%p2933_p2), %s2007_s22, 4294965248  ;;  %p12_p3 = scmp.ge.s32.totalorder %s3132_s15, 6   ;;  %s4263_s9 = smov %s3074_s10 }
 0x298   : > { %s4264_s10 = smov %s3078_s11  ;;  %s4265_s11 = smov %s3143_s18 }
 0x299   : > { %s4266_s12 = smov %s3132_s15  ;;  %14 = sbr.rel (!%p12_p3) target bundleno = 3 (0x3), region = 63 }
 0x2a0   :  { %2012 = vsyncpa [#allocation3], 1 }
 0x2a1   :  { %2014 = vsyncpa [#allocation3 + $0x1], 1 }

</bundles_post_ra>
